<compile_context>
chip_gen: v7x
topology: tpu7x:2x2x1
jax: 0.10.0
libtpu: 0.0.40
codegen_flags: <defaults>
</compile_context>

<pallas_src>
import jax
import jax.numpy as jnp
from jax.experimental import pallas as pl
from jax.experimental.pallas import tpu as pltpu

IN_DIM = 100 + 4     # 104
IN_PAD = 128         # features zero-padded to the 128-lane width
H1 = 512
H2 = 256
OUT_DIM = 1
BATCH_TILE = 256     # rows per grid step (multiple of 256 -> v6e/v7x MXU aligned)


def _leaky_relu(x, slope=0.2):
    return jnp.where(x > 0, x, slope * x)


def discriminator_kernel(zt_ref, w1_ref, b1_ref, w2_ref, b2_ref, w3_ref, b3_ref,
                         out_ref):
    """Fused 3-layer MLP + sigmoid for one (feature-major) batch tile."""
    zt = zt_ref[...]                                                # (128, TB) bf16

    # Layer 1 (MXU): (512,128) @ (128,TB) -> (512,TB) f32
    h = jnp.dot(w1_ref[...], zt, preferred_element_type=jnp.float32)
    h = _leaky_relu(h + b1_ref[...])

    # Layer 2 (MXU): (256,512) @ (512,TB) -> (256,TB) f32
    h = jnp.dot(w2_ref[...], h.astype(jnp.bfloat16),
                preferred_element_type=jnp.float32)
    h = _leaky_relu(h + b2_ref[...])

    # Layer 3: N=1 matmul replaced by VPU multiply + cross-sublane reduce.
    logit = jnp.sum(h * w3_ref[...], axis=0, keepdims=True) + b3_ref[...]  # (1, TB)

    # Sigmoid: exp + approximate reciprocal both land on the (idle) EUP slot.
    val = pl.reciprocal(1.0 + jnp.exp(-logit), approx=True)

    out_ref[...] = val[None, :, :].astype(out_ref.dtype)           # (1, 1, TB)


@jax.jit
def discriminator_forward(z, params):
    """z: (B, 104) float32 -> validity: (B, 1) float32."""
    w1, b1, w2, b2, w3, b3 = params
    B = z.shape[0]
    B_pad = ((B + BATCH_TILE - 1) // BATCH_TILE) * BATCH_TILE
    num_tiles = B_pad // BATCH_TILE

    # One-time layout plumbing in XLA: pad batch + features, transpose so the
    # batch sits on the lane axis, cast matmul operands to bf16.
    zt = jnp.pad(z, ((0, B_pad - B), (0, IN_PAD - IN_DIM))).T.astype(jnp.bfloat16)
    w1p = jnp.pad(w1, ((0, 0), (0, IN_PAD - IN_DIM))).astype(jnp.bfloat16)
    w2b = w2.astype(jnp.bfloat16)

    full = lambda i: (0, 0)   # weights/biases: same full block every grid step

    out = pl.pallas_call(
        discriminator_kernel,
        out_shape=jax.ShapeDtypeStruct((num_tiles, 1, BATCH_TILE), jnp.float32),
        grid=(num_tiles,),
        in_specs=[
            pl.BlockSpec((IN_PAD, BATCH_TILE), lambda i: (0, i)),   # z^T tile
            pl.BlockSpec((H1, IN_PAD), full),                       # W1 (bf16)
            pl.BlockSpec((H1, 1), full),                            # b1 (f32 col)
            pl.BlockSpec((H2, H1), full),                           # W2 (bf16)
            pl.BlockSpec((H2, 1), full),                            # b2 (f32 col)
            pl.BlockSpec((H2, 1), full),                            # W3 column
            pl.BlockSpec((1, 1), full),                             # b3
        ],
        out_specs=pl.BlockSpec((1, 1, BATCH_TILE), lambda i: (i, 0, 0)),
        compiler_params=pltpu.CompilerParams(
            dimension_semantics=("parallel",)),
    )(zt, w1p, b1, w2b, b2, w3, b3)

    # (num_tiles, 1, TB) -> (B_pad, 1) -> strip batch padding.
    return out.reshape(-1, OUT_DIM)[:B]


def init_params(key):
    """PyTorch-Linear-style init U(-1/sqrt(fan_in), 1/sqrt(fan_in)).
    W1/W2 stored (out, in); biases as (out, 1) columns; W3 as a (256, 1) column."""
    ks = jax.random.split(key, 6)

    def lin(kw, kb, fan_in, fan_out):
        bound = 1.0 / jnp.sqrt(jnp.float32(fan_in))
        w = jax.random.uniform(kw, (fan_out, fan_in), jnp.float32, -bound, bound)
        b = jax.random.uniform(kb, (fan_out, 1), jnp.float32, -bound, bound)
        return w, b

    w1, b1 = lin(ks[0], ks[1], IN_DIM, H1)      # (512,104), (512,1)
    w2, b2 = lin(ks[2], ks[3], H1, H2)          # (256,512), (256,1)
    w3r, b3 = lin(ks[4], ks[5], H2, OUT_DIM)    # (1,256),   (1,1)
    return (w1, b1, w2, b2, w3r.T, b3)          # W3 stored as (256,1)


def reference_forward(z, params):
    """Plain-JAX (f32) reference of the PyTorch forward."""
    w1, b1, w2, b2, w3, b3 = params
    h = z @ w1.T + b1.T
    h = jnp.where(h > 0, h, 0.2 * h)
    h = h @ w2.T + b2.T
    h = jnp.where(h > 0, h, 0.2 * h)
    logit = h @ w3 + b3
    return jax.nn.sigmoid(logit)


if __name__ == "__main__":
    key = jax.random.PRNGKey(0)
    k_param, k_z = jax.random.split(key)

    params = init_params(k_param)
    batch = 2
    z = jax.random.normal(k_z, (batch, IN_DIM), jnp.float32)

    validity = jax.block_until_ready(discriminator_forward(z, params))
    ref = reference_forward(z, params)

    assert validity.shape == (batch, OUT_DIM), validity.shape
    # bf16 matmuls + approx reciprocal -> relaxed tolerance on the sigmoid output.
    assert jnp.allclose(validity, ref, atol=2e-2), (validity, ref)

    print("KERNEL_OK")
</pallas_src>

<mosaic_0001>
module attributes {stable_mosaic.version = 11 : i64} {
  func.func @discriminator_kernel(%arg0: i32, %arg1: memref<128x256xbf16, #tpu.memory_space<vmem>>, %arg2: memref<512x128xbf16, #tpu.memory_space<vmem>>, %arg3: memref<512x1xf32, #tpu.memory_space<vmem>>, %arg4: memref<256x512xbf16, #tpu.memory_space<vmem>>, %arg5: memref<256x1xf32, #tpu.memory_space<vmem>>, %arg6: memref<256x1xf32, #tpu.memory_space<vmem>>, %arg7: memref<1x1xf32, #tpu.memory_space<vmem>>, %arg8: memref<1x1x256xf32, #tpu.memory_space<vmem>>) attributes {dimension_semantics = [#tpu.dimension_semantics<parallel>], iteration_bounds = array<i64: 1>, scalar_prefetch = 0 : i64, scratch_operands = 0 : i64, tpu.core_type = #tpu.core_type<tc>, window_params = [{transform_indices = @transform_0, window_bounds = array<i64: 128, 256>}, {pipeline_mode = #tpu.pipeline_mode<synchronous>, transform_indices = @transform_1, window_bounds = array<i64: 512, 128>}, {pipeline_mode = #tpu.pipeline_mode<synchronous>, transform_indices = @transform_2, window_bounds = array<i64: 512, 1>}, {pipeline_mode = #tpu.pipeline_mode<synchronous>, transform_indices = @transform_3, window_bounds = array<i64: 256, 512>}, {pipeline_mode = #tpu.pipeline_mode<synchronous>, transform_indices = @transform_4, window_bounds = array<i64: 256, 1>}, {pipeline_mode = #tpu.pipeline_mode<synchronous>, transform_indices = @transform_5, window_bounds = array<i64: 256, 1>}, {pipeline_mode = #tpu.pipeline_mode<synchronous>, transform_indices = @transform_6, window_bounds = array<i64: 1, 1>}, {transform_indices = @transform_7, window_bounds = array<i64: 1, 1, 256>}]} {
    %c0 = arith.constant 0 : index
    %c0_0 = arith.constant 0 : index
    %0 = vector.load %arg1[%c0, %c0_0] : memref<128x256xbf16, #tpu.memory_space<vmem>>, vector<128x256xbf16>
    %c0_1 = arith.constant 0 : index
    %c0_2 = arith.constant 0 : index
    %1 = vector.load %arg2[%c0_1, %c0_2] : memref<512x128xbf16, #tpu.memory_space<vmem>>, vector<512x128xbf16>
    %cst = arith.constant dense<0.000000e+00> : vector<512x256xf32>
    %2 = tpu.matmul %1, %0, %cst {dimension_numbers = #tpu.dot_dimension_numbers<[1], [0], [0], [1], [0, 0, 1, 1], [], []>} : vector<512x128xbf16>, vector<128x256xbf16>, vector<512x256xf32> -> vector<512x256xf32>
    %c0_3 = arith.constant 0 : index
    %c0_4 = arith.constant 0 : index
    %3 = vector.load %arg3[%c0_3, %c0_4] : memref<512x1xf32, #tpu.memory_space<vmem>>, vector<512x1xf32>
    %4 = vector.broadcast %3 : vector<512x1xf32> to vector<512x256xf32>
    %5 = arith.addf %2, %4 : vector<512x256xf32>
    %cst_5 = arith.constant 0.000000e+00 : f32
    %6 = vector.broadcast %cst_5 : f32 to vector<512x256xf32>
    %7 = arith.cmpf ogt, %5, %6 : vector<512x256xf32>
    %cst_6 = arith.constant 2.000000e-01 : f32
    %8 = vector.broadcast %cst_6 : f32 to vector<512x256xf32>
    %9 = arith.mulf %8, %5 : vector<512x256xf32>
    %10 = arith.select %7, %5, %9 : vector<512x256xi1>, vector<512x256xf32>
    %c0_7 = arith.constant 0 : index
    %c0_8 = arith.constant 0 : index
    %11 = vector.load %arg4[%c0_7, %c0_8] : memref<256x512xbf16, #tpu.memory_space<vmem>>, vector<256x512xbf16>
    %12 = arith.truncf %10 : vector<512x256xf32> to vector<512x256xbf16>
    %cst_9 = arith.constant dense<0.000000e+00> : vector<256x256xf32>
    %13 = tpu.matmul %11, %12, %cst_9 {dimension_numbers = #tpu.dot_dimension_numbers<[1], [0], [0], [1], [0, 0, 1, 1], [], []>} : vector<256x512xbf16>, vector<512x256xbf16>, vector<256x256xf32> -> vector<256x256xf32>
    %c0_10 = arith.constant 0 : index
    %c0_11 = arith.constant 0 : index
    %14 = vector.load %arg5[%c0_10, %c0_11] : memref<256x1xf32, #tpu.memory_space<vmem>>, vector<256x1xf32>
    %15 = vector.broadcast %14 : vector<256x1xf32> to vector<256x256xf32>
    %16 = arith.addf %13, %15 : vector<256x256xf32>
    %cst_12 = arith.constant 0.000000e+00 : f32
    %17 = vector.broadcast %cst_12 : f32 to vector<256x256xf32>
    %18 = arith.cmpf ogt, %16, %17 : vector<256x256xf32>
    %cst_13 = arith.constant 2.000000e-01 : f32
    %19 = vector.broadcast %cst_13 : f32 to vector<256x256xf32>
    %20 = arith.mulf %19, %16 : vector<256x256xf32>
    %21 = arith.select %18, %16, %20 : vector<256x256xi1>, vector<256x256xf32>
    %c0_14 = arith.constant 0 : index
    %c0_15 = arith.constant 0 : index
    %22 = vector.load %arg6[%c0_14, %c0_15] : memref<256x1xf32, #tpu.memory_space<vmem>>, vector<256x1xf32>
    %23 = vector.broadcast %22 : vector<256x1xf32> to vector<256x256xf32>
    %24 = arith.mulf %21, %23 : vector<256x256xf32>
    %cst_16 = arith.constant dense<0.000000e+00> : vector<256xf32>
    %25 = vector.multi_reduction <add>, %24, %cst_16 [0] : vector<256x256xf32> to vector<256xf32>
    %26 = vector.shape_cast %25 : vector<256xf32> to vector<1x256xf32>
    %c0_17 = arith.constant 0 : index
    %c0_18 = arith.constant 0 : index
    %27 = vector.load %arg7[%c0_17, %c0_18] : memref<1x1xf32, #tpu.memory_space<vmem>>, vector<1x1xf32>
    %28 = vector.broadcast %27 : vector<1x1xf32> to vector<1x256xf32>
    %29 = arith.addf %26, %28 : vector<1x256xf32>
    %cst_19 = arith.constant 0.000000e+00 : f32
    %30 = vector.broadcast %cst_19 : f32 to vector<1x256xf32>
    %31 = arith.subf %30, %29 : vector<1x256xf32>
    %32 = math.exp %31 : vector<1x256xf32>
    %cst_20 = arith.constant 1.000000e+00 : f32
    %33 = vector.broadcast %cst_20 : f32 to vector<1x256xf32>
    %34 = arith.addf %33, %32 : vector<1x256xf32>
    %35 = tpu.reciprocal %34 {approx = true} : vector<1x256xf32> -> vector<1x256xf32>
    %36 = vector.shape_cast %35 : vector<1x256xf32> to vector<1x1x256xf32>
    %c0_21 = arith.constant 0 : index
    %c0_22 = arith.constant 0 : index
    %c0_23 = arith.constant 0 : index
    %37 = vector.load %arg8[%c0_21, %c0_22, %c0_23] : memref<1x1x256xf32, #tpu.memory_space<vmem>>, vector<1x1x256xf32>
    tpu.vector_store %arg8[%c0_21, %c0_22, %c0_23], %36 {strides = array<i32>} : memref<1x1x256xf32, #tpu.memory_space<vmem>>, vector<1x1x256xf32>,
    return
  }
  func.func @transform_0(%arg0: i32) -> (i32, i32) {
    %c0_i32 = arith.constant 0 : i32
    %c0_i32_0 = arith.constant 0 : i32
    return %c0_i32, %arg0 : i32, i32
  }
  func.func @transform_1(%arg0: i32) -> (i32, i32) {
    %c0_i32 = arith.constant 0 : i32
    %c0_i32_0 = arith.constant 0 : i32
    %c0_i32_1 = arith.constant 0 : i32
    return %c0_i32, %c0_i32_0 : i32, i32
  }
  func.func @transform_2(%arg0: i32) -> (i32, i32) {
    %c0_i32 = arith.constant 0 : i32
    %c0_i32_0 = arith.constant 0 : i32
    %c0_i32_1 = arith.constant 0 : i32
    return %c0_i32, %c0_i32_0 : i32, i32
  }
  func.func @transform_3(%arg0: i32) -> (i32, i32) {
    %c0_i32 = arith.constant 0 : i32
    %c0_i32_0 = arith.constant 0 : i32
    %c0_i32_1 = arith.constant 0 : i32
    return %c0_i32, %c0_i32_0 : i32, i32
  }
  func.func @transform_4(%arg0: i32) -> (i32, i32) {
    %c0_i32 = arith.constant 0 : i32
    %c0_i32_0 = arith.constant 0 : i32
    %c0_i32_1 = arith.constant 0 : i32
    return %c0_i32, %c0_i32_0 : i32, i32
  }
  func.func @transform_5(%arg0: i32) -> (i32, i32) {
    %c0_i32 = arith.constant 0 : i32
    %c0_i32_0 = arith.constant 0 : i32
    %c0_i32_1 = arith.constant 0 : i32
    return %c0_i32, %c0_i32_0 : i32, i32
  }
  func.func @transform_6(%arg0: i32) -> (i32, i32) {
    %c0_i32 = arith.constant 0 : i32
    %c0_i32_0 = arith.constant 0 : i32
    %c0_i32_1 = arith.constant 0 : i32
    return %c0_i32, %c0_i32_0 : i32, i32
  }
  func.func @transform_7(%arg0: i32) -> (i32, i32, i32) {
    %c0_i32 = arith.constant 0 : i32
    %c0_i32_0 = arith.constant 0 : i32
    %c0_i32_1 = arith.constant 0 : i32
    return %arg0, %c0_i32, %c0_i32_0 : i32, i32, i32
  }
}

</mosaic_0001>

<bundles_post_ra>
// kernel: discriminator_forward.1
= control target key start
LH: loop header
LB: loop body
LE: loop exit
PB: predicated region body
PF: predicated region fallthrough
CT: control target
= control target key end

     0   :  { %v3535_v0 = vmov 0   ;;  %s4616_s2 = inlined_call_operand.vmem [shape: f32[512,1], index: 2, kind: input, shape index: {}]   ;;  %s4617_s0 = inlined_call_operand.vmem [shape: bf16[128,256], index: 0, kind: input, shape index: {}]   ;;  %s4618_s1 = inlined_call_operand.vmem [shape: bf16[512,128], index: 1, kind: input, shape index: {}]   ;;  %s4619_s6 = inlined_call_operand.<no memory space> [shape: f32[1,1], index: 6, kind: input, shape index: {}]   ;;  %s4620_s4 = inlined_call_operand.vmem [shape: f32[256,1], index: 4, kind: input, shape index: {}]   ;;  %s4621_s5 = inlined_call_operand.vmem [shape: f32[256,1], index: 5, kind: input, shape index: {}]   ;;  %s4622_s3 = inlined_call_operand.vmem [shape: bf16[256,512], index: 3, kind: input, shape index: {}]   ;;  %s4623_s7 = inlined_call_operand.vmem [shape: f32[1,1,256], index: 7, kind: output, shape index: {}]  }
   0x1   :  { %3374 = vset.pattern.permute.xlu1 %v3535_v0  ;;  %3373 = vset.pattern.permute.xlu0 %v3535_v0  ;;  %v111_v1 = vld [vmem:[%s4616_s2 + $0x10] sm:$0xff]  ;;  %v109_v2 = vld [vmem:[%s4616_s2] sm:$0xff]  ;;  %v112_v5 = vld [vmem:[%s4616_s2 + $0x18] sm:$0xff] }
   0x2   :  { %185 = vperm.xlu1 %3374, %v111_v1   ;;  %175 = vperm.xlu0 %3373, %v109_v2   ;;  %v3375_v3 = vld [vmem:[%s4617_s0 + $0x4] ss:$8 sps:$4 sm:$0xff]   ;;  %v3377_v4 = vld [vmem:[%s4617_s0] ss:$8 sps:$4 sm:$0xff]   ;;  %v3378_v7 = vld [vmem:[%s4617_s0 + $0x14] ss:$8 sps:$4 sm:$0xff]  }
   0x3   :  { %v110_v6 = vld [vmem:[%s4616_s2 + $0x8] sm:$0xff]  ;;  %797 = vmatprep.mubr.bf16.mxu0 %v3535_v0  ;;  %765 = vmatprep.subr.bf16.mxu0 %v3375_v3  ;;  %v3380_v8 = vld [vmem:[%s4617_s0 + $0x10] ss:$8 sps:$4 sm:$0xff]   ;;  %v113_v10 = vld [vmem:[%s4616_s2 + $0x20] sm:$0xff] }
   0x4   :  { %766 = vmatpush1.bf16.msra.mxu0 %v3377_v4  ;;  %v114_v9 = vld [vmem:[%s4616_s2 + $0x28] sm:$0xff]  ;;  %v116_v13 = vld [vmem:[%s4616_s2 + $0x38] sm:$0xff]  ;;  %v115_v14 = vld [vmem:[%s4616_s2 + $0x30] sm:$0xff] }
   0x5   :  { %767 = vmatprep.subr.bf16.mxu0 %v3378_v7  ;;  %v3381_v11 = vld [vmem:[%s4617_s0 + $0x24] ss:$8 sps:$4 sm:$0xff]   ;;  %v3383_v12 = vld [vmem:[%s4617_s0 + $0x20] ss:$8 sps:$4 sm:$0xff]   ;;  %v3384_v15 = vld [vmem:[%s4617_s0 + $0x34] ss:$8 sps:$4 sm:$0xff]  }
   0x6   :  { %190 = vperm.xlu1 %3374, %v112_v5   ;;  %180 = vperm.xlu0 %3373, %v110_v6   ;;  %v3386_v16 = vld [vmem:[%s4617_s0 + $0x30] ss:$8 sps:$4 sm:$0xff]   ;;  %v118_v17 = vld [vmem:[%s4616_s2 + $0x48] sm:$0xff]  ;;  %v117_v18 = vld [vmem:[%s4616_s2 + $0x40] sm:$0xff] }
   0x7   :  { %v3387_v19 = vld [vmem:[%s4617_s0 + $0x44] ss:$8 sps:$4 sm:$0xff]   ;;  %v3389_v20 = vld [vmem:[%s4617_s0 + $0x40] ss:$8 sps:$4 sm:$0xff]   ;;  %v120_v21 = vld [vmem:[%s4616_s2 + $0x58] sm:$0xff] }
   0x8   :  { %768 = vmatpush1.bf16.msra.mxu0 %v3380_v8  ;;  %v119_v22 = vld [vmem:[%s4616_s2 + $0x50] sm:$0xff]  ;;  %v122_v25 = vld [vmem:[%s4616_s2 + $0x68] sm:$0xff]  ;;  %v121_v26 = vld [vmem:[%s4616_s2 + $0x60] sm:$0xff] }
   0x9   :  { %769 = vmatprep.subr.bf16.mxu0 %v3381_v11  ;;  %v3390_v23 = vld [vmem:[%s4617_s0 + $0x54] ss:$8 sps:$4 sm:$0xff]   ;;  %v3392_v24 = vld [vmem:[%s4617_s0 + $0x50] ss:$8 sps:$4 sm:$0xff]   ;;  %v3393_v27 = vld [vmem:[%s4617_s0 + $0x64] ss:$8 sps:$4 sm:$0xff]  }
   0xa   :  { %200 = vperm.xlu1 %3374, %v114_v9   ;;  %195 = vperm.xlu0 %3373, %v113_v10   ;;  %v3395_v28 = vld [vmem:[%s4617_s0 + $0x60] ss:$8 sps:$4 sm:$0xff]   ;;  %v124_v29 = vld [vmem:[%s4616_s2 + $0x78] sm:$0xff]  ;;  %v123_v30 = vld [vmem:[%s4616_s2 + $0x70] sm:$0xff] }
   0xb   :  { %v3396_v31 = vld [vmem:[%s4617_s0 + $0x74] ss:$8 sps:$4 sm:$0xff]   ;;  %v3398_v32 = vld [vmem:[%s4617_s0 + $0x70] ss:$8 sps:$4 sm:$0xff]   ;;  %v126_v33 = vld [vmem:[%s4616_s2 + $0x88] sm:$0xff] }
   0xc   :  { %770 = vmatpush1.bf16.msra.mxu0 %v3383_v12  ;;  %v125_v34 = vld [vmem:[%s4616_s2 + $0x80] sm:$0xff]  ;;  %v128_v36 = vld [vmem:[%s4616_s2 + $0x98] sm:$0xff]  ;;  %v127_v37 = vld [vmem:[%s4616_s2 + $0x90] sm:$0xff] }
   0xd   :  { %771 = vmatprep.subr.bf16.mxu0 %v3384_v15  ;;  %v3399_v35 = vld [vmem:[%s4618_s1] sm:$0xff]   ;;  %v130_v38 = vld [vmem:[%s4616_s2 + $0xa8] sm:$0xff]  ;;  %v132_v41 = vld [vmem:[%s4616_s2 + $0xb8] sm:$0xff] }
   0xe   :  { %210 = vperm.xlu1 %3374, %v116_v13   ;;  %205 = vperm.xlu0 %3373, %v115_v14   ;;  %v129_v39 = vld [vmem:[%s4616_s2 + $0xa0] sm:$0xff]  ;;  %v3400_v40 = vld [vmem:[%s4618_s1 + $0x8] sm:$0xff]   ;;  %v131_v42 = vld [vmem:[%s4616_s2 + $0xb0] sm:$0xff] }
   0xf   :  { %v134_v43 = vld [vmem:[%s4616_s2 + $0xc8] sm:$0xff]  ;;  %v133_v44 = vld [vmem:[%s4616_s2 + $0xc0] sm:$0xff]  ;;  %v3401_v45 = vld [vmem:[%s4618_s1 + $0x10] sm:$0xff]  }
  0x10   :  { %772 = vmatpush1.bf16.msra.mxu0 %v3386_v16  ;;  %v136_v46 = vld [vmem:[%s4616_s2 + $0xd8] sm:$0xff]  ;;  %v135_v47 = vld [vmem:[%s4616_s2 + $0xd0] sm:$0xff]  ;;  %v138_v48 = vld [vmem:[%s4616_s2 + $0xe8] sm:$0xff] }
  0x11   :  { %773 = vmatprep.subr.bf16.mxu0 %v3387_v19  ;;  %v137_v49 = vld [vmem:[%s4616_s2 + $0xe0] sm:$0xff]  ;;  %v3402_v50 = vld [vmem:[%s4618_s1 + $0x18] sm:$0xff]   ;;  %v139_v52 = vld [vmem:[%s4616_s2 + $0xf0] sm:$0xff] }
  0x12   :  { %220 = vperm.xlu1 %3374, %v118_v17   ;;  %215 = vperm.xlu0 %3373, %v117_v18   ;;  %v140_v51 = vld [vmem:[%s4616_s2 + $0xf8] sm:$0xff]  ;;  %v142_v53 = vld [vmem:[%s4616_s2 + $0x108] sm:$0xff]  ;;  %v141_v54 = vld [vmem:[%s4616_s2 + $0x100] sm:$0xff] }
  0x13   :  { %v3403_v55 = vld [vmem:[%s4618_s1 + $0x20] sm:$0xff]   ;;  %v144_v56 = vld [vmem:[%s4616_s2 + $0x118] sm:$0xff]  ;;  %v143_v57 = vld [vmem:[%s4616_s2 + $0x110] sm:$0xff] }
  0x14   :  { %774 = vmatpush1.bf16.msra.mxu0 %v3389_v20  ;;  %v146_v58 = vld [vmem:[%s4616_s2 + $0x128] sm:$0xff]  ;;  %v145_v59 = vld [vmem:[%s4616_s2 + $0x120] sm:$0xff]  ;;  %v148_v61 = vld [vmem:[%s4616_s2 + $0x138] sm:$0xff] }
  0x15   :  { %775 = vmatprep.subr.bf16.mxu0 %v3390_v23  ;;  %v3404_v60 = vld [vmem:[%s4618_s1 + $0x28] sm:$0xff]   ;;  %v147_v62 = vld [vmem:[%s4616_s2 + $0x130] sm:$0xff]  ;;  %v149_v1 = vld [vmem:[%s4616_s2 + $0x140] sm:$0xff] }
  0x16   :  { %230 = vperm.xlu1 %3374, %v120_v21   ;;  %225 = vperm.xlu0 %3373, %v119_v22   ;;  %v150_v63 = vld [vmem:[%s4616_s2 + $0x148] sm:$0xff]  ;;  %v3405_v2 = vld [vmem:[%s4618_s1 + $0x30] sm:$0xff]   ;;  %v152_v3 = vld [vmem:[%s4616_s2 + $0x158] sm:$0xff] }
  0x17   :  { %v151_v4 = vld [vmem:[%s4616_s2 + $0x150] sm:$0xff]  ;;  %v154_v5 = vld [vmem:[%s4616_s2 + $0x168] sm:$0xff]  ;;  %v153_v6 = vld [vmem:[%s4616_s2 + $0x160] sm:$0xff] }
  0x18   :  { %776 = vmatpush1.bf16.msra.mxu0 %v3392_v24  ;;  %v3406_v7 = vld [vmem:[%s4618_s1 + $0x38] sm:$0xff]   ;;  %v155_v9 = vld [vmem:[%s4616_s2 + $0x170] sm:$0xff]  ;;  %v158_v10 = vld [vmem:[%s4616_s2 + $0x188] sm:$0xff] }
  0x19   :  { %777 = vmatprep.subr.bf16.mxu0 %v3393_v27  ;;  %v156_v8 = vld [vmem:[%s4616_s2 + $0x178] sm:$0xff]  ;;  %v157_v11 = vld [vmem:[%s4616_s2 + $0x180] sm:$0xff]  ;;  %v159_v14 = vld [vmem:[%s4616_s2 + $0x190] sm:$0xff] }
  0x1a   :  { %240 = vperm.xlu1 %3374, %v122_v25   ;;  %235 = vperm.xlu0 %3373, %v121_v26   ;;  %v3407_v12 = vld [vmem:[%s4618_s1 + $0x40] sm:$0xff]   ;;  %v160_v13 = vld [vmem:[%s4616_s2 + $0x198] sm:$0xff]  ;;  %v162_v15 = vld [vmem:[%s4616_s2 + $0x1a8] sm:$0xff] }
  0x1b   :  { %v161_v16 = vld [vmem:[%s4616_s2 + $0x1a0] sm:$0xff]  ;;  %v3408_v17 = vld [vmem:[%s4618_s1 + $0x48] sm:$0xff]   ;;  %v164_v18 = vld [vmem:[%s4616_s2 + $0x1b8] sm:$0xff] }
  0x1c   :  { %778 = vmatpush1.bf16.msra.mxu0 %v3395_v28  ;;  %v163_v19 = vld [vmem:[%s4616_s2 + $0x1b0] sm:$0xff]  ;;  %v166_v20 = vld [vmem:[%s4616_s2 + $0x1c8] sm:$0xff]  ;;  %v165_v21 = vld [vmem:[%s4616_s2 + $0x1c0] sm:$0xff] }
  0x1d   :  { %779 = vmatprep.subr.bf16.mxu0 %v3396_v31  ;;  %v3409_v22 = vld [vmem:[%s4618_s1 + $0x50] sm:$0xff]   ;;  %v168_v23 = vld [vmem:[%s4616_s2 + $0x1d8] sm:$0xff]  ;;  %v170_v25 = vld [vmem:[%s4616_s2 + $0x1e8] sm:$0xff] }
  0x1e   :  { %250 = vperm.xlu1 %3374, %v124_v29   ;;  %245 = vperm.xlu0 %3373, %v123_v30   ;;  %v167_v24 = vld [vmem:[%s4616_s2 + $0x1d0] sm:$0xff]  ;;  %v169_v26 = vld [vmem:[%s4616_s2 + $0x1e0] sm:$0xff]  ;;  %v3410_v27 = vld [vmem:[%s4618_s1 + $0x58] sm:$0xff]   ;;  %v12_v30 = vstv %s4619_s6 }
  0x1f   :  { %v172_v28 = vld [vmem:[%s4616_s2 + $0x1f8] sm:$0xff]  ;;  %v171_v29 = vld [vmem:[%s4616_s2 + $0x1f0] sm:$0xff]  ;;  %13 = vst [vmem:[#allocation2] sm:$0x1] %v12_v30  ;;  %v1631_v31 = vld [vmem:[%s4620_s4 + $0x8] sm:$0xff] }
  0x20   :  { %780 = vmatpush1.bf16.msra.mxu0 %v3398_v32  ;;  %v1630_v32 = vld [vmem:[%s4620_s4] sm:$0xff] }
  0x22   :  { %260 = vperm.xlu1 %3374, %v126_v33   ;;  %255 = vperm.xlu0 %3373, %v125_v34   ;;  %v3411_v33 = vld [vmem:[%s4618_s1 + $0x60] sm:$0xff]   ;;  %v1633_v34 = vld [vmem:[%s4620_s4 + $0x18] sm:$0xff] }
  0x23   :  { %798 = vmatmul.mubr.bf16.vlgmr.msra.gmra.mrb[0].mxu0 %v3399_v35  ;;  %v1632_v35 = vld [vmem:[%s4620_s4 + $0x10] sm:$0xff] }
  0x24   :  { %807 = vmatprep.mubr.bf16.mxu0 %v3535_v0 }
  0x26   :  { %270 = vperm.xlu1 %3374, %v128_v36   ;;  %265 = vperm.xlu0 %3373, %v127_v37   ;;  %v1635_v36 = vld [vmem:[%s4620_s4 + $0x28] sm:$0xff]  ;;  %v1634_v37 = vld [vmem:[%s4620_s4 + $0x20] sm:$0xff] }
  0x2a   :  { %280 = vperm.xlu1 %3374, %v130_v38   ;;  %275 = vperm.xlu0 %3373, %v129_v39   ;;  %v3412_v38 = vld [vmem:[%s4618_s1 + $0x68] sm:$0xff]   ;;  %v1637_v39 = vld [vmem:[%s4620_s4 + $0x38] sm:$0xff] }
  0x2b   :  { %808 = vmatmul.mubr.bf16.gmra.mrb[4].mxu0 %v3400_v40  ;;  %v1636_v40 = vld [vmem:[%s4620_s4 + $0x30] sm:$0xff] }
  0x2c   :  { %817 = vmatprep.mubr.bf16.mxu0 %v3535_v0 }
  0x2e   :  { %290 = vperm.xlu1 %3374, %v132_v41   ;;  %285 = vperm.xlu0 %3373, %v131_v42   ;;  %v1639_v41 = vld [vmem:[%s4620_s4 + $0x48] sm:$0xff]  ;;  %v1638_v42 = vld [vmem:[%s4620_s4 + $0x40] sm:$0xff] }
  0x32   :  { %300 = vperm.xlu1 %3374, %v134_v43   ;;  %295 = vperm.xlu0 %3373, %v133_v44   ;;  %v3413_v43 = vld [vmem:[%s4618_s1 + $0x70] sm:$0xff]   ;;  %v1641_v44 = vld [vmem:[%s4620_s4 + $0x58] sm:$0xff] }
  0x33   :  { %818 = vmatmul.mubr.bf16.gmra.mrb[8].mxu0 %v3401_v45  ;;  %v1640_v45 = vld [vmem:[%s4620_s4 + $0x50] sm:$0xff] }
  0x34   :  { %827 = vmatprep.mubr.bf16.mxu0 %v3535_v0 }
  0x36   :  { %310 = vperm.xlu1 %3374, %v136_v46   ;;  %305 = vperm.xlu0 %3373, %v135_v47   ;;  %v1643_v46 = vld [vmem:[%s4620_s4 + $0x68] sm:$0xff]  ;;  %v1642_v47 = vld [vmem:[%s4620_s4 + $0x60] sm:$0xff] }
  0x3a   :  { %320 = vperm.xlu1 %3374, %v138_v48   ;;  %315 = vperm.xlu0 %3373, %v137_v49   ;;  %v3414_v48 = vld [vmem:[%s4618_s1 + $0x78] sm:$0xff]  }
  0x3b   :  { %828 = vmatmul.mubr.bf16.gmra.mrb[12].mxu0 %v3402_v50  ;;  %v1645_v49 = vld [vmem:[%s4620_s4 + $0x78] sm:$0xff]  ;;  %v1644_v50 = vld [vmem:[%s4620_s4 + $0x70] sm:$0xff] }
  0x3c   :  { %837 = vmatprep.mubr.bf16.mxu0 %v3535_v0 }
  0x3e   :  { %330 = vperm.xlu1 %3374, %v140_v51   ;;  %325 = vperm.xlu0 %3373, %v139_v52   ;;  %v1647_v51 = vld [vmem:[%s4620_s4 + $0x88] sm:$0xff]  ;;  %v1646_v52 = vld [vmem:[%s4620_s4 + $0x80] sm:$0xff] }
  0x42   :  { %340 = vperm.xlu1 %3374, %v142_v53   ;;  %335 = vperm.xlu0 %3373, %v141_v54   ;;  %v3415_v53 = vld [vmem:[%s4618_s1 + $0x80] sm:$0xff]   ;;  %v1649_v54 = vld [vmem:[%s4620_s4 + $0x98] sm:$0xff] }
  0x43   :  { %838 = vmatmul.mubr.bf16.gmra.mrb[16].mxu0 %v3403_v55  ;;  %v1648_v55 = vld [vmem:[%s4620_s4 + $0x90] sm:$0xff] }
  0x44   :  { %847 = vmatprep.mubr.bf16.mxu0 %v3535_v0 }
  0x46   :  { %350 = vperm.xlu1 %3374, %v144_v56   ;;  %345 = vperm.xlu0 %3373, %v143_v57   ;;  %v2720_v56 = vld [vmem:[%s4621_s5] sm:$0xff] }
  0x47   :  { %v1650_v57 = vld [vmem:[%s4620_s4 + $0xa0] sm:$0xff] }
  0x4a   :  { %360 = vperm.xlu1 %3374, %v146_v58   ;;  %355 = vperm.xlu0 %3373, %v145_v59   ;;  %v3416_v59 = vld [vmem:[%s4618_s1 + $0x88] sm:$0xff]  }
  0x4b   :  { %848 = vmatmul.mubr.bf16.gmra.mrb[20].mxu0 %v3404_v60 }
  0x4c   :  { %857 = vmatprep.mubr.bf16.mxu0 %v3535_v0 }
  0x4e   :  { %370 = vperm.xlu1 %3374, %v148_v61   ;;  %365 = vperm.xlu0 %3373, %v147_v62   ;;  %v2722_v61 = vld [vmem:[%s4621_s5 + $0x10] sm:$0xff]  ;;  %v2721_v62 = vld [vmem:[%s4621_s5 + $0x8] sm:$0xff] }
  0x52   :  { %380 = vperm.xlu1 %3374, %v150_v63   ;;  %375 = vperm.xlu0 %3373, %v149_v1   ;;  %v2724_v1 = vld [vmem:[%s4621_s5 + $0x20] sm:$0xff] }
  0x53   :  { %858 = vmatmul.mubr.bf16.gmra.mrb[24].mxu0 %v3405_v2  ;;  %v2723_v2 = vld [vmem:[%s4621_s5 + $0x18] sm:$0xff] }
  0x54   :  { %867 = vmatprep.mubr.bf16.mxu0 %v3535_v0 }
  0x56   :  { %390 = vperm.xlu1 %3374, %v152_v3   ;;  %385 = vperm.xlu0 %3373, %v151_v4   ;;  %v3417_v4 = vld [vmem:[%s4618_s1 + $0x90] sm:$0xff]  }
  0x5a   :  { %400 = vperm.xlu1 %3374, %v154_v5   ;;  %395 = vperm.xlu0 %3373, %v153_v6   ;;  %v2726_v5 = vld [vmem:[%s4621_s5 + $0x30] sm:$0xff]  ;;  %v2725_v6 = vld [vmem:[%s4621_s5 + $0x28] sm:$0xff] }
  0x5b   :  { %868 = vmatmul.mubr.bf16.gmra.mrb[28].mxu0 %v3406_v7 }
  0x5c   :  { %877 = vmatprep.mubr.bf16.mxu0 %v3535_v0 }
  0x5e   :  { %410 = vperm.xlu1 %3374, %v156_v8   ;;  %405 = vperm.xlu0 %3373, %v155_v9   ;;  %v2728_v9 = vld [vmem:[%s4621_s5 + $0x40] sm:$0xff] }
  0x62   :  { %420 = vperm.xlu1 %3374, %v158_v10   ;;  %415 = vperm.xlu0 %3373, %v157_v11   ;;  %v2727_v10 = vld [vmem:[%s4621_s5 + $0x38] sm:$0xff] }
  0x63   :  { %878 = vmatmul.mubr.bf16.gmra.mrb[32].mxu0 %v3407_v12  ;;  %v3418_v11 = vld [vmem:[%s4618_s1 + $0x98] sm:$0xff]  }
  0x64   :  { %887 = vmatprep.mubr.bf16.mxu0 %v3535_v0 }
  0x66   :  { %430 = vperm.xlu1 %3374, %v160_v13   ;;  %425 = vperm.xlu0 %3373, %v159_v14   ;;  %v2730_v13 = vld [vmem:[%s4621_s5 + $0x50] sm:$0xff]  ;;  %v2729_v14 = vld [vmem:[%s4621_s5 + $0x48] sm:$0xff] }
  0x6a   :  { %440 = vperm.xlu1 %3374, %v162_v15   ;;  %435 = vperm.xlu0 %3373, %v161_v16   ;;  %v2732_v16 = vld [vmem:[%s4621_s5 + $0x60] sm:$0xff] }
  0x6b   :  { %888 = vmatmul.mubr.bf16.gmra.mrb[36].mxu0 %v3408_v17  ;;  %v2731_v17 = vld [vmem:[%s4621_s5 + $0x58] sm:$0xff] }
  0x6c   :  { %897 = vmatprep.mubr.bf16.mxu0 %v3535_v0 }
  0x6e   :  { %450 = vperm.xlu1 %3374, %v164_v18   ;;  %445 = vperm.xlu0 %3373, %v163_v19   ;;  %v3419_v19 = vld [vmem:[%s4618_s1 + $0xa0] sm:$0xff]  }
  0x72   :  { %460 = vperm.xlu1 %3374, %v166_v20   ;;  %455 = vperm.xlu0 %3373, %v165_v21   ;;  %v2734_v21 = vld [vmem:[%s4621_s5 + $0x70] sm:$0xff] }
  0x73   :  { %898 = vmatmul.mubr.bf16.gmra.mrb[40].mxu0 %v3409_v22  ;;  %v2733_v22 = vld [vmem:[%s4621_s5 + $0x68] sm:$0xff] }
  0x74   :  { %907 = vmatprep.mubr.bf16.mxu0 %v3535_v0 }
  0x76   :  { %470 = vperm.xlu1 %3374, %v168_v23   ;;  %465 = vperm.xlu0 %3373, %v167_v24   ;;  %v2736_v24 = vld [vmem:[%s4621_s5 + $0x80] sm:$0xff] }
  0x7a   :  { %480 = vperm.xlu1 %3374, %v170_v25   ;;  %475 = vperm.xlu0 %3373, %v169_v26   ;;  %v2735_v25 = vld [vmem:[%s4621_s5 + $0x78] sm:$0xff] }
  0x7b   :  { %908 = vmatmul.mubr.bf16.gmra.mrb[44].mxu0 %v3410_v27  ;;  %v3420_v27 = vld [vmem:[%s4618_s1 + $0xa8] sm:$0xff]  }
  0x7c   :  { %917 = vmatprep.mubr.bf16.mxu0 %v3535_v0 }
  0x7e   :  { %490 = vperm.xlu1 %3374, %v172_v28   ;;  %485 = vperm.xlu0 %3373, %v171_v29   ;;  %v2738_v28 = vld [vmem:[%s4621_s5 + $0x90] sm:$0xff]  ;;  %v2737_v29 = vld [vmem:[%s4621_s5 + $0x88] sm:$0xff] }
  0x81   :  { %v3957_v58 = vpop.permute.xlu0 %175  ;;  %v3962_v60 = vpop.permute.xlu1 %185 }
  0x82   :  { %1669 = vperm.xlu1 %3374, %v1631_v31   ;;  %1664 = vperm.xlu0 %3373, %v1630_v32   ;;  %v2739_v32 = vld [vmem:[%s4621_s5 + $0x98] sm:$0xff] }
  0x83   :  { %918 = vmatmul.mubr.bf16.gmra.mrb[48].mxu0 %v3411_v33  ;;  %v1651_v33 = vld [vmem:[%s4620_s4 + $0xa8] sm:$0xff] }
  0x84   :  { %927 = vmatprep.mubr.bf16.mxu0 %v3535_v0 }
  0x85   :  { %v3971_v63 = vpop.permute.xlu0 %180  ;;  %v3979_v3 = vpop.permute.xlu1 %190 }
  0x86   :  { %1679 = vperm.xlu1 %3374, %v1633_v34   ;;  %1674 = vperm.xlu0 %3373, %v1632_v35   ;;  %v3421_v34 = vld [vmem:[%s4618_s1 + $0xb0] sm:$0xff]  }
  0x89   :  { %v3990_v7 = vpop.permute.xlu0 %195  ;;  %v3993_v8 = vpop.permute.xlu1 %200 }
  0x8a   :  { %1689 = vperm.xlu1 %3374, %v1635_v36   ;;  %1684 = vperm.xlu0 %3373, %v1634_v37   ;;  %v2740_v36 = vld [vmem:[%s4621_s5 + $0xa0] sm:$0xff]  ;;  %v1652_v37 = vld [vmem:[%s4620_s4 + $0xb0] sm:$0xff] }
  0x8b   :  { %928 = vmatmul.mubr.bf16.gmra.mrb[52].mxu0 %v3412_v38 }
  0x8c   :  { %937 = vmatprep.mubr.bf16.mxu0 %v3535_v0 }
  0x8d   :  { %v4004_v12 = vpop.permute.xlu0 %205  ;;  %v4012_v15 = vpop.permute.xlu1 %210 }
  0x8e   :  { %1699 = vperm.xlu1 %3374, %v1637_v39   ;;  %1694 = vperm.xlu0 %3373, %v1636_v40   ;;  %v2741_v39 = vld [vmem:[%s4621_s5 + $0xa8] sm:$0xff]  ;;  %v1653_v40 = vld [vmem:[%s4620_s4 + $0xb8] sm:$0xff] }
  0x91   :  { %v4021_v18 = vpop.permute.xlu0 %215  ;;  %v4026_v20 = vpop.permute.xlu1 %220 }
  0x92   :  { %1709 = vperm.xlu1 %3374, %v1639_v41   ;;  %1704 = vperm.xlu0 %3373, %v1638_v42   ;;  %v3422_v42 = vld [vmem:[%s4618_s1 + $0xb8] sm:$0xff]  }
  0x93   :  { %938 = vmatmul.mubr.bf16.gmra.mrb[56].mxu0 %v3413_v43 }
  0x94   :  { %947 = vmatprep.mubr.bf16.mxu0 %v3535_v0 }
  0x95   :  { %v4035_v23 = vpop.permute.xlu0 %225  ;;  %v4043_v26 = vpop.permute.xlu1 %230 }
  0x96   :  { %1719 = vperm.xlu1 %3374, %v1641_v44   ;;  %1714 = vperm.xlu0 %3373, %v1640_v45   ;;  %v2742_v44 = vld [vmem:[%s4621_s5 + $0xb0] sm:$0xff]  ;;  %v1654_v45 = vld [vmem:[%s4620_s4 + $0xc0] sm:$0xff] }
  0x99   :  { %v4054_v30 = vpop.permute.xlu0 %235  ;;  %v4057_v31 = vpop.permute.xlu1 %240 }
  0x9a   :  { %1729 = vperm.xlu1 %3374, %v1643_v46   ;;  %1724 = vperm.xlu0 %3373, %v1642_v47   ;;  %v2743_v47 = vld [vmem:[%s4621_s5 + $0xb8] sm:$0xff] }
  0x9b   :  { %948 = vmatmul.mubr.bf16.gmra.mrb[60].mxu0 %v3414_v48  ;;  %v1655_v48 = vld [vmem:[%s4620_s4 + $0xc8] sm:$0xff] }
  0x9c   :  { %957 = vmatprep.mubr.bf16.mxu0 %v3535_v0 }
  0x9d   :  { %v4068_v35 = vpop.permute.xlu0 %245  ;;  %v4076_v38 = vpop.permute.xlu1 %250 }
  0x9e   :  { %1739 = vperm.xlu1 %3374, %v1645_v49   ;;  %1734 = vperm.xlu0 %3373, %v1644_v50   ;;  %v3423_v50 = vld [vmem:[%s4618_s1 + $0xc0] sm:$0xff]  }
  0xa1   :  { %v4085_v41 = vpop.permute.xlu0 %255  ;;  %v4090_v43 = vpop.permute.xlu1 %260 }
  0xa2   :  { %1749 = vperm.xlu1 %3374, %v1647_v51   ;;  %1744 = vperm.xlu0 %3373, %v1646_v52   ;;  %v2744_v51 = vld [vmem:[%s4621_s5 + $0xc0] sm:$0xff]  ;;  %v1656_v52 = vld [vmem:[%s4620_s4 + $0xd0] sm:$0xff] }
  0xa3   :  { %958 = vmatmul.mubr.bf16.gmra.mrb[64].mxu0 %v3415_v53 }
  0xa4   :  { %967 = vmatprep.mubr.bf16.mxu0 %v3535_v0 }
  0xa5   :  { %v4099_v46 = vpop.permute.xlu0 %265  ;;  %v4107_v49 = vpop.permute.xlu1 %270 }
  0xa6   :  { %1759 = vperm.xlu1 %3374, %v1649_v54   ;;  %1754 = vperm.xlu0 %3373, %v1648_v55   ;;  %v2745_v55 = vld [vmem:[%s4621_s5 + $0xc8] sm:$0xff] }
  0xa9   :  { %v4118_v53 = vpop.permute.xlu0 %275  ;;  %v4121_v54 = vpop.permute.xlu1 %280 }
  0xaa   :  { %2754 = vperm.xlu1 %3374, %v2720_v56   ;;  %1764 = vperm.xlu0 %3373, %v1650_v57   ;;  %v1657_v56 = vld [vmem:[%s4620_s4 + $0xd8] sm:$0xff]  ;;  %v3424_v57 = vld [vmem:[%s4618_s1 + $0xc8] sm:$0xff]  }
  0xab   :  { %968 = vmatmul.mubr.bf16.gmra.mrb[68].mxu0 %v3416_v59 }
  0xac   :  { %977 = vmatprep.mubr.bf16.mxu0 %v3535_v0 }
  0xad   :  { %v4132_v59 = vpop.permute.xlu0 %285 }
  0xae   :  { %2764 = vperm.xlu1 %3374, %v2722_v61   ;;  %2759 = vperm.xlu0 %3373, %v2721_v62   ;;  %v2746_v61 = vld [vmem:[%s4621_s5 + $0xd0] sm:$0xff]  ;;  %v1658_v62 = vld [vmem:[%s4620_s4 + $0xe0] sm:$0xff] }
  0xb2   :  { %2774 = vperm.xlu1 %3374, %v2724_v1   ;;  %2769 = vperm.xlu0 %3373, %v2723_v2   ;;  %v4140_v1 = vpop.permute.xlu1 %290  ;;  %v2747_v2 = vld [vmem:[%s4621_s5 + $0xd8] sm:$0xff] }
  0xb3   :  { %978 = vmatmul.mubr.bf16.gmra.mrb[72].mxu0 %v3417_v4  ;;  %v1659_v4 = vld [vmem:[%s4620_s4 + $0xe8] sm:$0xff] }
  0xb4   :  { %987 = vmatprep.mubr.bf16.mxu0 %v3535_v0 }
  0xb6   :  { %2784 = vperm.xlu1 %3374, %v2726_v5   ;;  %2779 = vperm.xlu0 %3373, %v2725_v6   ;;  %v4149_v5 = vpop.permute.xlu0 %295  ;;  %v3425_v6 = vld [vmem:[%s4618_s1 + $0xd0] sm:$0xff]  }
  0xba   :  { %2794 = vperm.xlu1 %3374, %v2728_v9   ;;  %2789 = vperm.xlu0 %3373, %v2727_v10   ;;  %v4154_v9 = vpop.permute.xlu1 %300  ;;  %v2748_v10 = vld [vmem:[%s4621_s5 + $0xe0] sm:$0xff] }
  0xbb   :  { %988 = vmatmul.mubr.bf16.gmra.mrb[76].mxu0 %v3418_v11  ;;  %v1660_v11 = vld [vmem:[%s4620_s4 + $0xf0] sm:$0xff] }
  0xbc   :  { %997 = vmatprep.mubr.bf16.mxu0 %v3535_v0 }
  0xbe   :  { %2804 = vperm.xlu1 %3374, %v2730_v13   ;;  %2799 = vperm.xlu0 %3373, %v2729_v14   ;;  %v4163_v13 = vpop.permute.xlu0 %305 }
  0xc2   :  { %2814 = vperm.xlu1 %3374, %v2732_v16   ;;  %2809 = vperm.xlu0 %3373, %v2731_v17   ;;  %v2749_v16 = vld [vmem:[%s4621_s5 + $0xe8] sm:$0xff]  ;;  %v1661_v17 = vld [vmem:[%s4620_s4 + $0xf8] sm:$0xff] }
  0xc3   :  { %998 = vmatmul.mubr.bf16.gmra.mrb[80].mxu0 %v3419_v19  ;;  %v4171_v19 = vpop.permute.xlu1 %310 }
  0xc4   :  { %1007 = vmatprep.mubr.bf16.mxu0 %v3535_v0 }
  0xc6   :  { %2824 = vperm.xlu1 %3374, %v2734_v21   ;;  %2819 = vperm.xlu0 %3373, %v2733_v22  }
  0xca   :  { %2834 = vperm.xlu1 %3374, %v2736_v24   ;;  %2829 = vperm.xlu0 %3373, %v2735_v25   ;;  %v3426_v24 = vld [vmem:[%s4618_s1 + $0xd8] sm:$0xff]  }
  0xcb   :  { %1008 = vmatmul.mubr.bf16.gmra.mrb[84].mxu0 %v3420_v27 }
  0xcc   :  { %1017 = vmatprep.mubr.bf16.mxu0 %v3535_v0 }
  0xce   :  { %2844 = vperm.xlu1 %3374, %v2738_v28   ;;  %2839 = vperm.xlu0 %3373, %v2737_v29  }
  0xd2   :  { %2849 = vperm.xlu1 %3374, %v2739_v32   ;;  %1769 = vperm.xlu0 %3373, %v1651_v33   ;;  %v2751_v33 = vld [vmem:[%s4621_s5 + $0xf8] sm:$0xff] }
  0xd3   :  { %1018 = vmatmul.mubr.bf16.gmra.mrb[88].mxu0 %v3421_v34  ;;  %v2750_v34 = vld [vmem:[%s4621_s5 + $0xf0] sm:$0xff] }
  0xd4   :  { %1027 = vmatprep.mubr.bf16.mxu0 %v3535_v0 }
  0xd6   :  { %2854 = vperm.xlu1 %3374, %v2740_v36   ;;  %1774 = vperm.xlu0 %3373, %v1652_v37   ;;  %v4185_v36 = vpop.permute.xlu0 %315 }
  0xda   :  { %2859 = vperm.xlu1 %3374, %v2741_v39   ;;  %1779 = vperm.xlu0 %3373, %v1653_v40   ;;  %v3050_v40 = vld [vmem:[#allocation2] sm:$0x1] }
  0xdb   :  { %1028 = vmatmul.mubr.bf16.gmra.mrb[92].mxu0 %v3422_v42  ;;  %v4189_v42 = vpop.permute.xlu1 %320 }
  0xdc   :  { %1037 = vmatprep.mubr.bf16.mxu0 %v3535_v0 }
  0xde   :  { %2864 = vperm.xlu1 %3374, %v2742_v44   ;;  %1784 = vperm.xlu0 %3373, %v1654_v45  }
  0xe2   :  { %2869 = vperm.xlu1 %3374, %v2743_v47   ;;  %1789 = vperm.xlu0 %3373, %v1655_v48  }
  0xe3   :  { %1038 = vmatmul.mubr.bf16.gmra.mrb[96].mxu0 %v3423_v50 }
  0xe4   :  { %1047 = vmatprep.mubr.bf16.mxu0 %v3535_v0 }
  0xe6   :  { %2874 = vperm.xlu1 %3374, %v2744_v51   ;;  %1794 = vperm.xlu0 %3373, %v1656_v52  }
  0xea   :  { %2879 = vperm.xlu1 %3374, %v2745_v55   ;;  %1799 = vperm.xlu0 %3373, %v1657_v56  }
  0xeb   :  { %1048 = vmatmul.mubr.bf16.gmra.mrb[100].mxu0 %v3424_v57 }
  0xec   :  { %1057 = vmatprep.mubr.bf16.mxu0 %v3535_v0 }
  0xee   :  { %2884 = vperm.xlu1 %3374, %v2746_v61   ;;  %1804 = vperm.xlu0 %3373, %v1658_v62   ;;  %v3436_v62 = vld [vmem:[%s4622_s3 + $0x44] ss:$16 sps:$4 sm:$0xff]  }
  0xef   :  { %2194 = vmatprep.mubr.bf16.mxu1 %v3436_v62 }
  0xf2   :  { %2889 = vperm.xlu1 %3374, %v2747_v2   ;;  %1809 = vperm.xlu0 %3373, %v1659_v4   ;;  %v4200_v2 = vpop.permute.xlu0 %325 }
  0xf3   :  { %1058 = vmatmul.mubr.bf16.gmra.mrb[104].mxu0 %v3425_v6 }
  0xf4   :  { %1067 = vmatprep.mubr.bf16.mxu0 %v3535_v0 }
  0xf6   :  { %2894 = vperm.xlu1 %3374, %v2748_v10   ;;  %1814 = vperm.xlu0 %3373, %v1660_v11   ;;  %v799_v14 = vpop.f32.mrb[0].mxu0 }
  0xf7   :  { %v800_v21 = vadd.f32 %v799_v14, %v3957_v58  ;;  %v801_v22 = vpop.f32.mrb[1].mxu0 }
  0xf8   :  { %v802_v25 = vadd.f32 %v801_v22, %v3957_v58  ;;  %v803_v27 = vpop.f32.mrb[2].mxu0 }
  0xf9   :  { %v1246_v28 = vmul.f32 0.2, %v800_v21  ;;  %v804_v29 = vadd.f32 %v803_v27, %v3971_v63  ;;  %v805_v32 = vpop.f32.mrb[3].mxu0  ;;  %vm1118_vm0 = vcmp.gt.f32.partialorder %v800_v21, 0.0 }
  0xfa   :  { %2899 = vperm.xlu1 %3374, %v2749_v16   ;;  %1819 = vperm.xlu0 %3373, %v1661_v17   ;;  %v1247_v37 = vmul.f32 0.2, %v802_v25  ;;  %v806_v58 = vadd.f32 %v805_v32, %v3971_v63  ;;  %vm1119_vm1 = vcmp.gt.f32.partialorder %v802_v25, 0.0  ;;  %v3427_v63 = vld [vmem:[%s4618_s1 + $0xe0] sm:$0xff]  }
  0xfb   :  { %1068 = vmatmul.mubr.bf16.gmra.mrb[108].mxu0 %v3426_v24  ;;  %vm1120_vm2 = vcmp.gt.f32.partialorder %v804_v29, 0.0  ;;  %v1248_v39 = vmul.f32 0.2, %v804_v29  ;;  %v1374_v45 = vsel %vm1118_vm0, %v800_v21, %v1246_v28 }
  0xfc   :  { %1077 = vmatprep.mubr.bf16.mxu0 %v3535_v0  ;;  %vm1121_vm3 = vcmp.gt.f32.partialorder %v806_v58, 0.0  ;;  %v1249_v44 = vmul.f32 0.2, %v806_v58  ;;  %v1375_v55 = vsel %vm1119_vm1, %v802_v25, %v1247_v37  ;;  %v3428_v25 = vld [vmem:[%s4618_s1 + $0xe8] sm:$0xff]  }
  0xfd   :  { %v1376_v47 = vsel %vm1120_vm2, %v804_v29, %v1248_v39 }
  0xfe   :  { %2909 = vperm.xlu1 %3374, %v2751_v33   ;;  %2904 = vperm.xlu0 %3373, %v2750_v34   ;;  %v809_v48 = vpop.f32.mrb[4].mxu0  ;;  %v1566_v50 = vpack.c.bf16 %v1376_v47, %v1374_v45  ;;  %v1377_v56 = vsel %vm1121_vm3, %v806_v58, %v1249_v44 }
  0xff   :  { %v810_v51 = vadd.f32 %v809_v48, %v3962_v60  ;;  %v811_v52 = vpop.f32.mrb[5].mxu0  ;;  %v1567_v61 = vpack.c.bf16 %v1377_v56, %v1375_v55 }
 0x100   :  { %v812_v57 = vadd.f32 %v811_v52, %v3962_v60  ;;  %v813_v4 = vpop.f32.mrb[6].mxu0 }
 0x101   :  { %v1250_v6 = vmul.f32 0.2, %v810_v51  ;;  %v814_v10 = vadd.f32 %v813_v4, %v3979_v3  ;;  %v815_v11 = vpop.f32.mrb[7].mxu0  ;;  %2142 = vmatprep.subr.bf16.mxu0 %v1567_v61  ;;  %3211 = vmatprep.subr.bf16.mxu1 %v1567_v61  ;;  %vm1122_vm4 = vcmp.gt.f32.partialorder %v810_v51, 0.0 }
 0x102   :  { %3053 = vperm.xlu0 %3373, %v3050_v40   ;;  %v1251_v14 = vmul.f32 0.2, %v812_v57  ;;  %v816_v16 = vadd.f32 %v815_v11, %v3979_v3  ;;  %2143 = vmatpush1.bf16.msra.mxu0 %v1566_v50  ;;  %vm1123_vm5 = vcmp.gt.f32.partialorder %v812_v57, 0.0 }
 0x103   :  { %3227 = vmatpush1.bf16.msra.mxu1 %v1566_v50  ;;  %vm1124_vm6 = vcmp.gt.f32.partialorder %v814_v10, 0.0  ;;  %v1252_v60 = vmul.f32 0.2, %v814_v10  ;;  %1078 = vmatmul.mubr.bf16.gmra.mrb[112].mxu0 %v3427_v63  ;;  %v1378_v21 = vsel %vm1122_vm4, %v810_v51, %v1250_v6  ;;  %v3429_v51 = vld [vmem:[%s4618_s1 + $0xf0] sm:$0xff]  }
 0x104   :  { %vm1125_vm7 = vcmp.gt.f32.partialorder %v816_v16, 0.0  ;;  %v1253_v17 = vmul.f32 0.2, %v816_v16  ;;  %1087 = vmatprep.mubr.bf16.mxu0 %v3535_v0  ;;  %v1379_v29 = vsel %vm1123_vm5, %v812_v57, %v1251_v14 }
 0x105   :  { %v1380_v22 = vsel %vm1124_vm6, %v814_v10, %v1252_v60 }
 0x106   :  { %v819_v24 = vpop.f32.mrb[8].mxu0  ;;  %v1568_v27 = vpack.c.bf16 %v1380_v22, %v1378_v21  ;;  %v1381_v32 = vsel %vm1125_vm7, %v816_v16, %v1253_v17 }
 0x107   :  { %v820_v3 = vadd.f32 %v819_v24, %v3990_v7  ;;  %v821_v28 = vpop.f32.mrb[9].mxu0  ;;  %v1569_v34 = vpack.c.bf16 %v1381_v32, %v1379_v29  ;;  %v3430_v32 = vld [vmem:[%s4618_s1 + $0xf8] sm:$0xff]  }
 0x108   :  { %v822_v33 = vadd.f32 %v821_v28, %v3990_v7  ;;  %v823_v37 = vpop.f32.mrb[10].mxu0 }
 0x109   :  { %vm1126_vm8 = vcmp.gt.f32.partialorder %v820_v3, 0.0  ;;  %v1254_v58 = vmul.f32 0.2, %v820_v3  ;;  %v824_v39 = vadd.f32 %v823_v37, %v3993_v8  ;;  %v825_v40 = vpop.f32.mrb[11].mxu0  ;;  %2144 = vmatprep.subr.bf16.mxu0 %v1569_v34  ;;  %3212 = vmatprep.subr.bf16.mxu1 %v1569_v34 }
 0x10a   :  { %vm1127_vm9 = vcmp.gt.f32.partialorder %v822_v33, 0.0  ;;  %v1255_v44 = vmul.f32 0.2, %v822_v33  ;;  %v826_v45 = vadd.f32 %v825_v40, %v3993_v8  ;;  %2145 = vmatpush1.bf16.msra.mxu0 %v1568_v27  ;;  %3228 = vmatpush1.bf16.msra.mxu1 %v1568_v27 }
 0x10b   :  { %vm1128_vm10 = vcmp.gt.f32.partialorder %v824_v39, 0.0  ;;  %v1256_v47 = vmul.f32 0.2, %v824_v39  ;;  %1088 = vmatmul.mubr.bf16.gmra.mrb[116].mxu0 %v3428_v25  ;;  %v1382_v48 = vsel %vm1126_vm8, %v820_v3, %v1254_v58 }
 0x10c   :  { %vm1129_vm11 = vcmp.gt.f32.partialorder %v826_v45, 0.0  ;;  %v1257_v7 = vmul.f32 0.2, %v826_v45  ;;  %1097 = vmatprep.mubr.bf16.mxu0 %v3535_v0  ;;  %v1383_v56 = vsel %vm1127_vm9, %v822_v33, %v1255_v44 }
 0x10d   :  { %v1384_v63 = vsel %vm1128_vm10, %v824_v39, %v1256_v47 }
 0x10e   :  { %v829_v50 = vpop.f32.mrb[12].mxu0  ;;  %v1570_v52 = vpack.c.bf16 %v1384_v63, %v1382_v48  ;;  %v1385_v57 = vsel %vm1129_vm11, %v826_v45, %v1257_v7 }
 0x10f   :  { %v830_v8 = vadd.f32 %v829_v50, %v4004_v12  ;;  %v831_v55 = vpop.f32.mrb[13].mxu0  ;;  %v1571_v62 = vpack.c.bf16 %v1385_v57, %v1383_v56 }
 0x110   :  { %v832_v61 = vadd.f32 %v831_v55, %v4004_v12  ;;  %v833_v4 = vpop.f32.mrb[14].mxu0 }
 0x111   :  { %v1258_v6 = vmul.f32 0.2, %v830_v8  ;;  %v834_v10 = vadd.f32 %v833_v4, %v4012_v15  ;;  %v835_v11 = vpop.f32.mrb[15].mxu0  ;;  %2146 = vmatprep.subr.bf16.mxu0 %v1571_v62  ;;  %3213 = vmatprep.subr.bf16.mxu1 %v1571_v62  ;;  %vm1130_vm12 = vcmp.gt.f32.partialorder %v830_v8, 0.0 }
 0x112   :  { %v1259_v14 = vmul.f32 0.2, %v832_v61  ;;  %v836_v16 = vadd.f32 %v835_v11, %v4012_v15  ;;  %2147 = vmatpush1.bf16.msra.mxu0 %v1570_v52  ;;  %3229 = vmatpush1.bf16.msra.mxu1 %v1570_v52  ;;  %vm1131_vm13 = vcmp.gt.f32.partialorder %v832_v61, 0.0 }
 0x113   :  { %vm1132_vm14 = vcmp.gt.f32.partialorder %v834_v10, 0.0  ;;  %v1260_v60 = vmul.f32 0.2, %v834_v10  ;;  %1098 = vmatmul.mubr.bf16.gmra.mrb[120].mxu0 %v3429_v51  ;;  %v1386_v17 = vsel %vm1130_vm12, %v830_v8, %v1258_v6 }
 0x114   :  { %vm1133_vm15 = vcmp.gt.f32.partialorder %v836_v16, 0.0  ;;  %v1261_v12 = vmul.f32 0.2, %v836_v16  ;;  %1107 = vmatprep.mubr.bf16.mxu0 %v3535_v0  ;;  %v1387_v3 = vsel %vm1131_vm13, %v832_v61, %v1259_v14  ;;  %v3433_v0 = vld [vmem:[%s4622_s3 + $0x4] ss:$16 sps:$4 sm:$0xff]  }
 0x115   :  { %v1388_v21 = vsel %vm1132_vm14, %v834_v10, %v1260_v60 }
 0x116   :  { %v839_v22 = vpop.f32.mrb[16].mxu0  ;;  %v1572_v24 = vpack.c.bf16 %v1388_v21, %v1386_v17  ;;  %v1389_v28 = vsel %vm1133_vm15, %v836_v16, %v1261_v12 }
 0x117   :  { %v840_v25 = vadd.f32 %v839_v22, %v4021_v18  ;;  %v841_v27 = vpop.f32.mrb[17].mxu0  ;;  %v1573_v29 = vpack.c.bf16 %v1389_v28, %v1387_v3 }
 0x118   :  { %v842_v15 = vadd.f32 %v841_v27, %v4021_v18  ;;  %v843_v33 = vpop.f32.mrb[18].mxu0 }
 0x119   :  { %v1262_v34 = vmul.f32 0.2, %v840_v25  ;;  %v844_v37 = vadd.f32 %v843_v33, %v4026_v20  ;;  %v845_v58 = vpop.f32.mrb[19].mxu0  ;;  %2148 = vmatprep.subr.bf16.mxu0 %v1573_v29  ;;  %3214 = vmatprep.subr.bf16.mxu1 %v1573_v29  ;;  %vm1134_vm0 = vcmp.gt.f32.partialorder %v840_v25, 0.0 }
 0x11a   :  { %v1263_v39 = vmul.f32 0.2, %v842_v15  ;;  %v846_v18 = vadd.f32 %v845_v58, %v4026_v20  ;;  %2149 = vmatpush1.bf16.msra.mxu0 %v1572_v24  ;;  %3230 = vmatpush1.bf16.msra.mxu1 %v1572_v24  ;;  %vm1135_vm1 = vcmp.gt.f32.partialorder %v842_v15, 0.0 }
 0x11b   :  { %vm1136_vm2 = vcmp.gt.f32.partialorder %v844_v37, 0.0  ;;  %v1264_v40 = vmul.f32 0.2, %v844_v37  ;;  %1108 = vmatmul.mubr.bf16.gmra.mrb[124].mxu0 %v3430_v32  ;;  %v1390_v45 = vsel %vm1134_vm0, %v840_v25, %v1262_v34 }
 0x11c   :  { %vm1137_vm3 = vcmp.gt.f32.partialorder %v846_v18, 0.0  ;;  %v1265_v44 = vmul.f32 0.2, %v846_v18  ;;  %2174 = vmatprep.mubr.bf16.mxu0 %v3433_v0  ;;  %v1391_v51 = vsel %vm1135_vm1, %v842_v15, %v1263_v39 }
 0x11d   :  { %v1392_v47 = vsel %vm1136_vm2, %v844_v37, %v1264_v40 }
 0x11e   :  { %v849_v7 = vpop.f32.mrb[20].mxu0  ;;  %v1574_v48 = vpack.c.bf16 %v1392_v47, %v1390_v45  ;;  %v1393_v52 = vsel %vm1137_vm3, %v846_v18, %v1265_v44 }
 0x11f   :  { %v850_v63 = vadd.f32 %v849_v7, %v4035_v23  ;;  %v851_v50 = vpop.f32.mrb[21].mxu0  ;;  %v1575_v8 = vpack.c.bf16 %v1393_v52, %v1391_v51 }
 0x120   :  { %v852_v20 = vadd.f32 %v851_v50, %v4035_v23  ;;  %v853_v55 = vpop.f32.mrb[22].mxu0 }
 0x121   :  { %v1266_v56 = vmul.f32 0.2, %v850_v63  ;;  %v854_v57 = vadd.f32 %v853_v55, %v4043_v26  ;;  %v855_v61 = vpop.f32.mrb[23].mxu0  ;;  %2150 = vmatprep.subr.bf16.mxu0 %v1575_v8  ;;  %3215 = vmatprep.subr.bf16.mxu1 %v1575_v8  ;;  %vm1138_vm4 = vcmp.gt.f32.partialorder %v850_v63, 0.0 }
 0x122   :  { %v1267_v62 = vmul.f32 0.2, %v852_v20  ;;  %v856_v4 = vadd.f32 %v855_v61, %v4043_v26  ;;  %2151 = vmatpush1.bf16.msra.mxu0 %v1574_v48  ;;  %3231 = vmatpush1.bf16.msra.mxu1 %v1574_v48  ;;  %vm1139_vm5 = vcmp.gt.f32.partialorder %v852_v20, 0.0 }
 0x123   :  { %vm1140_vm6 = vcmp.gt.f32.partialorder %v854_v57, 0.0  ;;  %v1268_v6 = vmul.f32 0.2, %v854_v57  ;;  %v1394_v23 = vsel %vm1138_vm4, %v850_v63, %v1266_v56 }
 0x124   :  { %vm1141_vm7 = vcmp.gt.f32.partialorder %v856_v4, 0.0  ;;  %v1269_v10 = vmul.f32 0.2, %v856_v4  ;;  %v1395_v17 = vsel %vm1139_vm5, %v852_v20, %v1267_v62 }
 0x125   :  { %v1396_v11 = vsel %vm1140_vm6, %v854_v57, %v1268_v6 }
 0x126   :  { %v859_v14 = vpop.f32.mrb[24].mxu0  ;;  %v1576_v16 = vpack.c.bf16 %v1396_v11, %v1394_v23  ;;  %v1397_v21 = vsel %vm1141_vm7, %v856_v4, %v1269_v10 }
 0x127   :  { %v860_v60 = vadd.f32 %v859_v14, %v4054_v30  ;;  %v861_v12 = vpop.f32.mrb[25].mxu0  ;;  %v1577_v24 = vpack.c.bf16 %v1397_v21, %v1395_v17 }
 0x128   :  { %v862_v22 = vadd.f32 %v861_v12, %v4054_v30  ;;  %v863_v26 = vpop.f32.mrb[26].mxu0 }
 0x129   :  { %v1270_v25 = vmul.f32 0.2, %v860_v60  ;;  %v864_v27 = vadd.f32 %v863_v26, %v4057_v31  ;;  %v865_v3 = vpop.f32.mrb[27].mxu0  ;;  %2152 = vmatprep.subr.bf16.mxu0 %v1577_v24  ;;  %3216 = vmatprep.subr.bf16.mxu1 %v1577_v24  ;;  %vm1142_vm8 = vcmp.gt.f32.partialorder %v860_v60, 0.0 }
 0x12a   :  { %v1271_v28 = vmul.f32 0.2, %v862_v22  ;;  %v866_v15 = vadd.f32 %v865_v3, %v4057_v31  ;;  %2153 = vmatpush1.bf16.msra.mxu0 %v1576_v16  ;;  %3232 = vmatpush1.bf16.msra.mxu1 %v1576_v16  ;;  %vm1143_vm9 = vcmp.gt.f32.partialorder %v862_v22, 0.0 }
 0x12b   :  { %vm1144_vm10 = vcmp.gt.f32.partialorder %v864_v27, 0.0  ;;  %v1272_v29 = vmul.f32 0.2, %v864_v27  ;;  %v1398_v30 = vsel %vm1142_vm8, %v860_v60, %v1270_v25 }
 0x12c   :  { %vm1145_vm11 = vcmp.gt.f32.partialorder %v866_v15, 0.0  ;;  %v1273_v32 = vmul.f32 0.2, %v866_v15  ;;  %v1399_v39 = vsel %vm1143_vm9, %v862_v22, %v1271_v28 }
 0x12d   :  { %v1400_v33 = vsel %vm1144_vm10, %v864_v27, %v1272_v29 }
 0x12e   :  { %v869_v0 = vpop.f32.mrb[28].mxu0  ;;  %v1578_v34 = vpack.c.bf16 %v1400_v33, %v1398_v30  ;;  %v1401_v18 = vsel %vm1145_vm11, %v866_v15, %v1273_v32 }
 0x12f   :  { %v870_v37 = vadd.f32 %v869_v0, %v4068_v35  ;;  %v871_v58 = vpop.f32.mrb[29].mxu0  ;;  %v1579_v44 = vpack.c.bf16 %v1401_v18, %v1399_v39 }
 0x130   :  { %v872_v40 = vadd.f32 %v871_v58, %v4068_v35  ;;  %v873_v31 = vpop.f32.mrb[30].mxu0 }
 0x131   :  { %v1274_v45 = vmul.f32 0.2, %v870_v37  ;;  %v874_v47 = vadd.f32 %v873_v31, %v4076_v38  ;;  %v875_v7 = vpop.f32.mrb[31].mxu0  ;;  %2154 = vmatprep.subr.bf16.mxu0 %v1579_v44  ;;  %3217 = vmatprep.subr.bf16.mxu1 %v1579_v44  ;;  %vm1146_vm12 = vcmp.gt.f32.partialorder %v870_v37, 0.0 }
 0x132   :  { %v1275_v48 = vmul.f32 0.2, %v872_v40  ;;  %v876_v63 = vadd.f32 %v875_v7, %v4076_v38  ;;  %2155 = vmatpush1.bf16.msra.mxu0 %v1578_v34  ;;  %3233 = vmatpush1.bf16.msra.mxu1 %v1578_v34  ;;  %vm1147_vm13 = vcmp.gt.f32.partialorder %v872_v40, 0.0 }
 0x133   :  { %vm1148_vm14 = vcmp.gt.f32.partialorder %v874_v47, 0.0  ;;  %v1276_v50 = vmul.f32 0.2, %v874_v47  ;;  %v1402_v35 = vsel %vm1146_vm12, %v870_v37, %v1274_v45 }
 0x134   :  { %vm1149_vm15 = vcmp.gt.f32.partialorder %v876_v63, 0.0  ;;  %v1277_v51 = vmul.f32 0.2, %v876_v63  ;;  %v1403_v57 = vsel %vm1147_vm13, %v872_v40, %v1275_v48 }
 0x135   :  { %v1404_v52 = vsel %vm1148_vm14, %v874_v47, %v1276_v50 }
 0x136   :  { %v879_v20 = vpop.f32.mrb[32].mxu0  ;;  %v1580_v8 = vpack.c.bf16 %v1404_v52, %v1402_v35  ;;  %v1405_v61 = vsel %vm1149_vm15, %v876_v63, %v1277_v51 }
 0x137   :  { %v880_v55 = vadd.f32 %v879_v20, %v4085_v41  ;;  %v881_v56 = vpop.f32.mrb[33].mxu0  ;;  %v1581_v4 = vpack.c.bf16 %v1405_v61, %v1403_v57 }
 0x138   :  { %v882_v62 = vadd.f32 %v881_v56, %v4085_v41  ;;  %v883_v38 = vpop.f32.mrb[34].mxu0 }
 0x139   :  { %v1278_v6 = vmul.f32 0.2, %v880_v55  ;;  %v884_v10 = vadd.f32 %v883_v38, %v4090_v43  ;;  %v885_v23 = vpop.f32.mrb[35].mxu0  ;;  %2156 = vmatprep.subr.bf16.mxu0 %v1581_v4  ;;  %3218 = vmatprep.subr.bf16.mxu1 %v1581_v4  ;;  %vm1150_vm0 = vcmp.gt.f32.partialorder %v880_v55, 0.0 }
 0x13a   :  { %v1279_v11 = vmul.f32 0.2, %v882_v62  ;;  %v886_v14 = vadd.f32 %v885_v23, %v4090_v43  ;;  %2157 = vmatpush1.bf16.msra.mxu0 %v1580_v8  ;;  %3234 = vmatpush1.bf16.msra.mxu1 %v1580_v8  ;;  %vm1151_vm1 = vcmp.gt.f32.partialorder %v882_v62, 0.0 }
 0x13b   :  { %vm1152_vm2 = vcmp.gt.f32.partialorder %v884_v10, 0.0  ;;  %v1280_v16 = vmul.f32 0.2, %v884_v10  ;;  %v1406_v41 = vsel %vm1150_vm0, %v880_v55, %v1278_v6 }
 0x13c   :  { %vm1153_vm3 = vcmp.gt.f32.partialorder %v886_v14, 0.0  ;;  %v1281_v60 = vmul.f32 0.2, %v886_v14  ;;  %v1407_v26 = vsel %vm1151_vm1, %v882_v62, %v1279_v11 }
 0x13d   :  { %v1408_v12 = vsel %vm1152_vm2, %v884_v10, %v1280_v16 }
 0x13e   :  { %v889_v17 = vpop.f32.mrb[36].mxu0  ;;  %v1582_v21 = vpack.c.bf16 %v1408_v12, %v1406_v41  ;;  %v1409_v25 = vsel %vm1153_vm3, %v886_v14, %v1281_v60 }
 0x13f   :  { %v890_v22 = vadd.f32 %v889_v17, %v4099_v46  ;;  %v891_v24 = vpop.f32.mrb[37].mxu0  ;;  %v1583_v3 = vpack.c.bf16 %v1409_v25, %v1407_v26 }
 0x140   :  { %v892_v27 = vadd.f32 %v891_v24, %v4099_v46  ;;  %v893_v43 = vpop.f32.mrb[38].mxu0 }
 0x141   :  { %v1282_v28 = vmul.f32 0.2, %v890_v22  ;;  %v894_v15 = vadd.f32 %v893_v43, %v4107_v49  ;;  %v895_v29 = vpop.f32.mrb[39].mxu0  ;;  %2158 = vmatprep.subr.bf16.mxu0 %v1583_v3  ;;  %3219 = vmatprep.subr.bf16.mxu1 %v1583_v3  ;;  %vm1154_vm4 = vcmp.gt.f32.partialorder %v890_v22, 0.0 }
 0x142   :  { %v1283_v32 = vmul.f32 0.2, %v892_v27  ;;  %v896_v30 = vadd.f32 %v895_v29, %v4107_v49  ;;  %2159 = vmatpush1.bf16.msra.mxu0 %v1582_v21  ;;  %3235 = vmatpush1.bf16.msra.mxu1 %v1582_v21  ;;  %vm1155_vm5 = vcmp.gt.f32.partialorder %v892_v27, 0.0 }
 0x143   :  { %vm1156_vm6 = vcmp.gt.f32.partialorder %v894_v15, 0.0  ;;  %v1284_v33 = vmul.f32 0.2, %v894_v15  ;;  %v1410_v46 = vsel %vm1154_vm4, %v890_v22, %v1282_v28 }
 0x144   :  { %vm1157_vm7 = vcmp.gt.f32.partialorder %v896_v30, 0.0  ;;  %v1285_v0 = vmul.f32 0.2, %v896_v30  ;;  %v1411_v40 = vsel %vm1155_vm5, %v892_v27, %v1283_v32 }
 0x145   :  { %v1412_v34 = vsel %vm1156_vm6, %v894_v15, %v1284_v33 }
 0x146   :  { %v899_v37 = vpop.f32.mrb[40].mxu0  ;;  %v1584_v58 = vpack.c.bf16 %v1412_v34, %v1410_v46  ;;  %v1413_v44 = vsel %vm1157_vm7, %v896_v30, %v1285_v0 }
 0x147   :  { %v900_v39 = vadd.f32 %v899_v37, %v4118_v53  ;;  %v901_v18 = vpop.f32.mrb[41].mxu0  ;;  %v1585_v45 = vpack.c.bf16 %v1413_v44, %v1411_v40 }
 0x148   :  { %v902_v31 = vadd.f32 %v901_v18, %v4118_v53  ;;  %v903_v49 = vpop.f32.mrb[42].mxu0 }
 0x149   :  { %v1286_v47 = vmul.f32 0.2, %v900_v39  ;;  %v904_v7 = vadd.f32 %v903_v49, %v4121_v54  ;;  %v905_v48 = vpop.f32.mrb[43].mxu0  ;;  %2160 = vmatprep.subr.bf16.mxu0 %v1585_v45  ;;  %3220 = vmatprep.subr.bf16.mxu1 %v1585_v45  ;;  %vm1158_vm8 = vcmp.gt.f32.partialorder %v900_v39, 0.0 }
 0x14a   :  { %v1287_v63 = vmul.f32 0.2, %v902_v31  ;;  %v906_v50 = vadd.f32 %v905_v48, %v4121_v54  ;;  %2161 = vmatpush1.bf16.msra.mxu0 %v1584_v58  ;;  %3236 = vmatpush1.bf16.msra.mxu1 %v1584_v58  ;;  %vm1159_vm9 = vcmp.gt.f32.partialorder %v902_v31, 0.0 }
 0x14b   :  { %vm1160_vm10 = vcmp.gt.f32.partialorder %v904_v7, 0.0  ;;  %v1288_v51 = vmul.f32 0.2, %v904_v7  ;;  %v1414_v53 = vsel %vm1158_vm8, %v900_v39, %v1286_v47 }
 0x14c   :  { %vm1161_vm11 = vcmp.gt.f32.partialorder %v906_v50, 0.0  ;;  %v1289_v35 = vmul.f32 0.2, %v906_v50  ;;  %v1415_v57 = vsel %vm1159_vm9, %v902_v31, %v1287_v63 }
 0x14d   :  { %v1416_v52 = vsel %vm1160_vm10, %v904_v7, %v1288_v51 }
 0x14e   :  { %v909_v20 = vpop.f32.mrb[44].mxu0  ;;  %v1586_v8 = vpack.c.bf16 %v1416_v52, %v1414_v53  ;;  %v1417_v61 = vsel %vm1161_vm11, %v906_v50, %v1289_v35 }
 0x14f   :  { %v910_v55 = vadd.f32 %v909_v20, %v4132_v59  ;;  %v911_v56 = vpop.f32.mrb[45].mxu0  ;;  %v1587_v4 = vpack.c.bf16 %v1417_v61, %v1415_v57 }
 0x150   :  { %v912_v62 = vadd.f32 %v911_v56, %v4132_v59  ;;  %v913_v54 = vpop.f32.mrb[46].mxu0 }
 0x151   :  { %v1290_v38 = vmul.f32 0.2, %v910_v55  ;;  %v914_v6 = vadd.f32 %v913_v54, %v4140_v1  ;;  %v915_v10 = vpop.f32.mrb[47].mxu0  ;;  %2162 = vmatprep.subr.bf16.mxu0 %v1587_v4  ;;  %3221 = vmatprep.subr.bf16.mxu1 %v1587_v4  ;;  %vm1162_vm12 = vcmp.gt.f32.partialorder %v910_v55, 0.0 }
 0x152   :  { %v1291_v23 = vmul.f32 0.2, %v912_v62  ;;  %v916_v11 = vadd.f32 %v915_v10, %v4140_v1  ;;  %2163 = vmatpush1.bf16.msra.mxu0 %v1586_v8  ;;  %3237 = vmatpush1.bf16.msra.mxu1 %v1586_v8  ;;  %vm1163_vm13 = vcmp.gt.f32.partialorder %v912_v62, 0.0 }
 0x153   :  { %vm1164_vm14 = vcmp.gt.f32.partialorder %v914_v6, 0.0  ;;  %v1292_v14 = vmul.f32 0.2, %v914_v6  ;;  %v1418_v59 = vsel %vm1162_vm12, %v910_v55, %v1290_v38 }
 0x154   :  { %vm1165_vm15 = vcmp.gt.f32.partialorder %v916_v11, 0.0  ;;  %v1293_v16 = vmul.f32 0.2, %v916_v11  ;;  %v1419_v22 = vsel %vm1163_vm13, %v912_v62, %v1291_v23 }
 0x155   :  { %v1420_v60 = vsel %vm1164_vm14, %v914_v6, %v1292_v14 }
 0x156   :  { %v919_v41 = vpop.f32.mrb[48].mxu0  ;;  %v1588_v12 = vpack.c.bf16 %v1420_v60, %v1418_v59  ;;  %v1421_v24 = vsel %vm1165_vm15, %v916_v11, %v1293_v16 }
 0x157   :  { %v920_v17 = vadd.f32 %v919_v41, %v4149_v5  ;;  %v921_v21 = vpop.f32.mrb[49].mxu0  ;;  %v1589_v25 = vpack.c.bf16 %v1421_v24, %v1419_v22 }
 0x158   :  { %v922_v26 = vadd.f32 %v921_v21, %v4149_v5  ;;  %v923_v1 = vpop.f32.mrb[50].mxu0 }
 0x159   :  { %v1294_v27 = vmul.f32 0.2, %v920_v17  ;;  %v924_v3 = vadd.f32 %v923_v1, %v4154_v9  ;;  %v925_v43 = vpop.f32.mrb[51].mxu0  ;;  %2164 = vmatprep.subr.bf16.mxu0 %v1589_v25  ;;  %3222 = vmatprep.subr.bf16.mxu1 %v1589_v25  ;;  %vm1166_vm0 = vcmp.gt.f32.partialorder %v920_v17, 0.0  ;;  %v336_v1 = vpop.permute.xlu0 %335 }
 0x15a   :  { %v1295_v28 = vmul.f32 0.2, %v922_v26  ;;  %v926_v15 = vadd.f32 %v925_v43, %v4154_v9  ;;  %2165 = vmatpush1.bf16.msra.mxu0 %v1588_v12  ;;  %3238 = vmatpush1.bf16.msra.mxu1 %v1588_v12  ;;  %vm1167_vm1 = vcmp.gt.f32.partialorder %v922_v26, 0.0 }
 0x15b   :  { %vm1168_vm2 = vcmp.gt.f32.partialorder %v924_v3, 0.0  ;;  %v1296_v29 = vmul.f32 0.2, %v924_v3  ;;  %v1422_v5 = vsel %vm1166_vm0, %v920_v17, %v1294_v27 }
 0x15c   :  { %vm1169_vm3 = vcmp.gt.f32.partialorder %v926_v15, 0.0  ;;  %v1297_v32 = vmul.f32 0.2, %v926_v15  ;;  %v1423_v37 = vsel %vm1167_vm1, %v922_v26, %v1295_v28 }
 0x15d   :  { %v1424_v30 = vsel %vm1168_vm2, %v924_v3, %v1296_v29 }
 0x15e   :  { %v929_v33 = vpop.f32.mrb[52].mxu0  ;;  %v1590_v0 = vpack.c.bf16 %v1424_v30, %v1422_v5  ;;  %v1425_v58 = vsel %vm1169_vm3, %v926_v15, %v1297_v32 }
 0x15f   :  { %v930_v46 = vadd.f32 %v929_v33, %v4163_v13  ;;  %v931_v34 = vpop.f32.mrb[53].mxu0  ;;  %v1591_v18 = vpack.c.bf16 %v1425_v58, %v1423_v37 }
 0x160   :  { %v932_v39 = vadd.f32 %v931_v34, %v4163_v13  ;;  %v933_v9 = vpop.f32.mrb[54].mxu0  ;;  %v3434_v34 = vld [vmem:[%s4622_s3 + $0x40] ss:$16 sps:$4 sm:$0xff]  }
 0x161   :  { %v1298_v40 = vmul.f32 0.2, %v930_v46  ;;  %v934_v44 = vadd.f32 %v933_v9, %v4171_v19  ;;  %v935_v31 = vpop.f32.mrb[55].mxu0  ;;  %2166 = vmatprep.subr.bf16.mxu0 %v1591_v18  ;;  %3223 = vmatprep.subr.bf16.mxu1 %v1591_v18  ;;  %vm1170_vm4 = vcmp.gt.f32.partialorder %v930_v46, 0.0 }
 0x162   :  { %v1299_v45 = vmul.f32 0.2, %v932_v39  ;;  %v936_v49 = vadd.f32 %v935_v31, %v4171_v19  ;;  %2167 = vmatpush1.bf16.msra.mxu0 %v1590_v0  ;;  %3239 = vmatpush1.bf16.msra.mxu1 %v1590_v0  ;;  %vm1171_vm5 = vcmp.gt.f32.partialorder %v932_v39, 0.0 }
 0x163   :  { %vm1172_vm6 = vcmp.gt.f32.partialorder %v934_v44, 0.0  ;;  %v1300_v47 = vmul.f32 0.2, %v934_v44  ;;  %v1426_v13 = vsel %vm1170_vm4, %v930_v46, %v1298_v40  ;;  %v3431_v46 = vld [vmem:[%s4622_s3] ss:$16 sps:$4 sm:$0xff]  }
 0x164   :  { %vm1173_vm7 = vcmp.gt.f32.partialorder %v936_v49, 0.0  ;;  %v1301_v7 = vmul.f32 0.2, %v936_v49  ;;  %v1427_v53 = vsel %vm1171_vm5, %v932_v39, %v1299_v45  ;;  %v3437_v40 = vld [vmem:[%s4622_s3 + $0x24] ss:$16 sps:$4 sm:$0xff]  }
 0x165   :  { %v1428_v48 = vsel %vm1172_vm6, %v934_v44, %v1300_v47  ;;  %v3440_v44 = vld [vmem:[%s4622_s3 + $0x64] ss:$16 sps:$4 sm:$0xff]  }
 0x166   :  { %v939_v63 = vpop.f32.mrb[56].mxu0  ;;  %v1592_v50 = vpack.c.bf16 %v1428_v48, %v1426_v13  ;;  %v1429_v52 = vsel %vm1173_vm7, %v936_v49, %v1301_v7  ;;  %v346_v49 = vpop.permute.xlu0 %345 }
 0x167   :  { %v940_v51 = vadd.f32 %v939_v63, %v4185_v36  ;;  %v941_v35 = vpop.f32.mrb[57].mxu0  ;;  %v1593_v8 = vpack.c.bf16 %v1429_v52, %v1427_v53 }
 0x168   :  { %v942_v20 = vadd.f32 %v941_v35, %v4185_v36  ;;  %v943_v19 = vpop.f32.mrb[58].mxu0 }
 0x169   :  { %v1302_v55 = vmul.f32 0.2, %v940_v51  ;;  %v944_v56 = vadd.f32 %v943_v19, %v4189_v42  ;;  %v945_v57 = vpop.f32.mrb[59].mxu0  ;;  %2168 = vmatprep.subr.bf16.mxu0 %v1593_v8  ;;  %3224 = vmatprep.subr.bf16.mxu1 %v1593_v8  ;;  %vm1174_vm8 = vcmp.gt.f32.partialorder %v940_v51, 0.0 }
 0x16a   :  { %v1303_v61 = vmul.f32 0.2, %v942_v20  ;;  %v946_v62 = vadd.f32 %v945_v57, %v4189_v42  ;;  %2169 = vmatpush1.bf16.msra.mxu0 %v1592_v50  ;;  %3240 = vmatpush1.bf16.msra.mxu1 %v1592_v50  ;;  %vm1175_vm9 = vcmp.gt.f32.partialorder %v942_v20, 0.0  ;;  %v331_v42 = vpop.permute.xlu1 %330  ;;  %v3439_v57 = vld [vmem:[%s4622_s3 + $0x20] ss:$16 sps:$4 sm:$0xff]  }
 0x16b   :  { %vm1176_vm10 = vcmp.gt.f32.partialorder %v944_v56, 0.0  ;;  %v1304_v4 = vmul.f32 0.2, %v944_v56  ;;  %v1430_v36 = vsel %vm1174_vm8, %v940_v51, %v1302_v55 }
 0x16c   :  { %vm1177_vm11 = vcmp.gt.f32.partialorder %v946_v62, 0.0  ;;  %v1305_v54 = vmul.f32 0.2, %v946_v62  ;;  %v1431_v14 = vsel %vm1175_vm9, %v942_v20, %v1303_v61 }
 0x16d   :  { %v1432_v38 = vsel %vm1176_vm10, %v944_v56, %v1304_v4  ;;  %v3442_v4 = vld [vmem:[%s4622_s3 + $0x60] ss:$16 sps:$4 sm:$0xff]  }
 0x16e   :  { %v949_v6 = vpop.f32.mrb[60].mxu0  ;;  %v1594_v10 = vpack.c.bf16 %v1432_v38, %v1430_v36  ;;  %v1433_v16 = vsel %vm1177_vm11, %v946_v62, %v1305_v54  ;;  %v341_v33 = vpop.permute.xlu1 %340  ;;  %v3443_v36 = vld [vmem:[%s4622_s3 + $0x84] ss:$16 sps:$4 sm:$0xff]  }
 0x16f   :  { %v950_v23 = vadd.f32 %v949_v6, %v4200_v2  ;;  %v951_v11 = vpop.f32.mrb[61].mxu0  ;;  %v1595_v60 = vpack.c.bf16 %v1433_v16, %v1431_v14 }
 0x170   :  { %v952_v59 = vadd.f32 %v951_v11, %v4200_v2  ;;  %v953_v41 = vpop.f32.mrb[62].mxu0 }
 0x171   :  { %v1306_v12 = vmul.f32 0.2, %v950_v23  ;;  %v954_v17 = vadd.f32 %v953_v41, %v331_v42  ;;  %v955_v21 = vpop.f32.mrb[63].mxu0  ;;  %2170 = vmatprep.subr.bf16.mxu0 %v1595_v60  ;;  %3225 = vmatprep.subr.bf16.mxu1 %v1595_v60  ;;  %vm1178_vm12 = vcmp.gt.f32.partialorder %v950_v23, 0.0 }
 0x172   :  { %v1307_v22 = vmul.f32 0.2, %v952_v59  ;;  %v956_v24 = vadd.f32 %v955_v21, %v331_v42  ;;  %2171 = vmatpush1.bf16.msra.mxu0 %v1594_v10  ;;  %3241 = vmatpush1.bf16.msra.mxu1 %v1594_v10  ;;  %vm1179_vm13 = vcmp.gt.f32.partialorder %v952_v59, 0.0  ;;  %v351_v53 = vpop.permute.xlu1 %350 }
 0x173   :  { %vm1180_vm14 = vcmp.gt.f32.partialorder %v954_v17, 0.0  ;;  %v1308_v26 = vmul.f32 0.2, %v954_v17  ;;  %v1434_v2 = vsel %vm1178_vm12, %v950_v23, %v1306_v12  ;;  %v356_v23 = vpop.permute.xlu0 %355 }
 0x174   :  { %vm1181_vm15 = vcmp.gt.f32.partialorder %v956_v24, 0.0  ;;  %v1309_v25 = vmul.f32 0.2, %v956_v24  ;;  %v1435_v29 = vsel %vm1179_vm13, %v952_v59, %v1307_v22 }
 0x175   :  { %v1436_v27 = vsel %vm1180_vm14, %v954_v17, %v1308_v26 }
 0x176   :  { %v959_v3 = vpop.f32.mrb[64].mxu0  ;;  %v1596_v43 = vpack.c.bf16 %v1436_v27, %v1434_v2  ;;  %v1437_v32 = vsel %vm1181_vm15, %v956_v24, %v1309_v25  ;;  %v361_v12 = vpop.permute.xlu1 %360  ;;  %v3445_v2 = vld [vmem:[%s4622_s3 + $0x80] ss:$16 sps:$4 sm:$0xff]  }
 0x177   :  { %v960_v28 = vadd.f32 %v959_v3, %v336_v1  ;;  %v961_v15 = vpop.f32.mrb[65].mxu0  ;;  %v1597_v30 = vpack.c.bf16 %v1437_v32, %v1435_v29  ;;  %v3446_v3 = vld [vmem:[%s4622_s3 + $0xa4] ss:$16 sps:$4 sm:$0xff]   ;;  %v366_v29 = vpop.permute.xlu0 %365 }
 0x178   :  { %v962_v5 = vadd.f32 %v961_v15, %v336_v1  ;;  %v963_v0 = vpop.f32.mrb[66].mxu0 }
 0x179   :  { %v1310_v37 = vmul.f32 0.2, %v960_v28  ;;  %v964_v39 = vadd.f32 %v963_v0, %v341_v33  ;;  %v965_v18 = vpop.f32.mrb[67].mxu0  ;;  %2172 = vmatprep.subr.bf16.mxu0 %v1597_v30  ;;  %3226 = vmatprep.subr.bf16.mxu1 %v1597_v30  ;;  %vm1182_vm0 = vcmp.gt.f32.partialorder %v960_v28, 0.0 }
 0x17a   :  { %v1311_v58 = vmul.f32 0.2, %v962_v5  ;;  %vm1183_vm1 = vcmp.gt.f32.partialorder %v962_v5, 0.0  ;;  %v966_v9 = vadd.f32 %v965_v18, %v341_v33  ;;  %2173 = vmatpush1.bf16.msra.mxu0 %v1596_v43  ;;  %3242 = vmatpush1.bf16.msra.mxu1 %v1596_v43 }
 0x17b   :  { %vm1184_vm2 = vcmp.gt.f32.partialorder %v964_v39, 0.0  ;;  %v1312_v31 = vmul.f32 0.2, %v964_v39  ;;  %v1438_v47 = vsel %vm1182_vm0, %v960_v28, %v1310_v37  ;;  %v371_v37 = vpop.permute.xlu1 %370 }
 0x17c   :  { %vm1185_vm3 = vcmp.gt.f32.partialorder %v966_v9, 0.0  ;;  %v1313_v45 = vmul.f32 0.2, %v966_v9  ;;  %v1439_v48 = vsel %vm1183_vm1, %v962_v5, %v1311_v58 }
 0x17d   :  { %v1440_v7 = vsel %vm1184_vm2, %v964_v39, %v1312_v31  ;;  %2175 = vmatmul.mubr.bf16.vlgmr.msra.gmra.mrb[128].mxu0 %v3431_v46  ;;  %2195 = vmatmul.mubr.bf16.vlgmr.msra.gmra.mrb[0].mxu1 %v3434_v34 }
 0x17e   :  { %v969_v13 = vpop.f32.mrb[68].mxu0  ;;  %v1598_v63 = vpack.c.bf16 %v1440_v7, %v1438_v47  ;;  %v1441_v35 = vsel %vm1185_vm3, %v966_v9, %v1313_v45  ;;  %2184 = vmatprep.mubr.bf16.mxu0 %v3437_v40  ;;  %2204 = vmatprep.mubr.bf16.mxu1 %v3440_v44  ;;  %v3448_v45 = vld [vmem:[%s4622_s3 + $0xa0] ss:$16 sps:$4 sm:$0xff]   ;;  %v3449_v47 = vld [vmem:[%s4622_s3 + $0xc4] ss:$16 sps:$4 sm:$0xff]  }
 0x17f   :  { %v970_v50 = vadd.f32 %v969_v13, %v346_v49  ;;  %v971_v51 = vpop.f32.mrb[69].mxu0  ;;  %v1599_v8 = vpack.c.bf16 %v1441_v35, %v1439_v48 }
 0x180   :  { %v972_v52 = vadd.f32 %v971_v51, %v346_v49  ;;  %v973_v20 = vpop.f32.mrb[70].mxu0 }
 0x181   :  { %v1314_v19 = vmul.f32 0.2, %v970_v50  ;;  %v974_v55 = vadd.f32 %v973_v20, %v351_v53  ;;  %v975_v56 = vpop.f32.mrb[71].mxu0  ;;  %vm1186_vm4 = vcmp.gt.f32.partialorder %v970_v50, 0.0  ;;  %2335 = vmatprep.subr.bf16.mxu1 %v1599_v8 }
 0x182   :  { %v1315_v61 = vmul.f32 0.2, %v972_v52  ;;  %v976_v62 = vadd.f32 %v975_v56, %v351_v53  ;;  %vm1187_vm5 = vcmp.gt.f32.partialorder %v972_v52, 0.0  ;;  %2336 = vmatpush1.bf16.msra.mxu1 %v1598_v63  ;;  %v376_v63 = vpop.permute.xlu0 %375 }
 0x183   :  { %vm1188_vm6 = vcmp.gt.f32.partialorder %v974_v55, 0.0  ;;  %v1316_v54 = vmul.f32 0.2, %v974_v55  ;;  %v1442_v6 = vsel %vm1186_vm4, %v970_v50, %v1314_v19  ;;  %v381_v19 = vpop.permute.xlu1 %380 }
 0x184   :  { %vm1189_vm7 = vcmp.gt.f32.partialorder %v976_v62, 0.0  ;;  %v1317_v38 = vmul.f32 0.2, %v976_v62  ;;  %v1443_v16 = vsel %vm1187_vm5, %v972_v52, %v1315_v61 }
 0x185   :  { %v1444_v10 = vsel %vm1188_vm6, %v974_v55, %v1316_v54  ;;  %2185 = vmatmul.mubr.bf16.gmra.mrb[132].mxu0 %v3439_v57  ;;  %2205 = vmatmul.mubr.bf16.gmra.mrb[4].mxu1 %v3442_v4 }
 0x186   :  { %v1600_v11 = vpack.c.bf16 %v1444_v10, %v1442_v6  ;;  %v979_v14 = vpop.f32.mrb[72].mxu0  ;;  %v1445_v59 = vsel %vm1189_vm7, %v976_v62, %v1317_v38  ;;  %2214 = vmatprep.mubr.bf16.mxu1 %v3443_v36  ;;  %v3451_v36 = vld [vmem:[%s4622_s3 + $0xc0] ss:$16 sps:$4 sm:$0xff]   ;;  %v3452_v6 = vld [vmem:[%s4622_s3 + $0xe4] ss:$16 sps:$4 sm:$0xff]  }
 0x187   :  { %v980_v60 = vadd.f32 %v979_v14, %v356_v23  ;;  %v981_v42 = vpop.f32.mrb[73].mxu0  ;;  %v1601_v41 = vpack.c.bf16 %v1445_v59, %v1443_v16  ;;  %v386_v14 = vpop.permute.xlu0 %385 }
 0x188   :  { %v982_v17 = vadd.f32 %v981_v42, %v356_v23  ;;  %v983_v21 = vpop.f32.mrb[74].mxu0 }
 0x189   :  { %v1318_v22 = vmul.f32 0.2, %v980_v60  ;;  %v984_v24 = vadd.f32 %v983_v21, %v361_v12  ;;  %v985_v26 = vpop.f32.mrb[75].mxu0  ;;  %2337 = vmatprep.subr.bf16.mxu1 %v1601_v41  ;;  %vm1190_vm8 = vcmp.gt.f32.partialorder %v980_v60, 0.0  ;;  %v391_v21 = vpop.permute.xlu1 %390 }
 0x18a   :  { %v1319_v25 = vmul.f32 0.2, %v982_v17  ;;  %v986_v1 = vadd.f32 %v985_v26, %v361_v12  ;;  %2338 = vmatpush1.bf16.msra.mxu1 %v1600_v11  ;;  %vm1191_vm9 = vcmp.gt.f32.partialorder %v982_v17, 0.0 }
 0x18b   :  { %vm1192_vm10 = vcmp.gt.f32.partialorder %v984_v24, 0.0  ;;  %v1320_v27 = vmul.f32 0.2, %v984_v24  ;;  %v1446_v28 = vsel %vm1190_vm8, %v980_v60, %v1318_v22 }
 0x18c   :  { %vm1193_vm11 = vcmp.gt.f32.partialorder %v986_v1, 0.0  ;;  %v1321_v43 = vmul.f32 0.2, %v986_v1  ;;  %v1447_v30 = vsel %vm1191_vm9, %v982_v17, %v1319_v25 }
 0x18d   :  { %v1448_v15 = vsel %vm1192_vm10, %v984_v24, %v1320_v27  ;;  %2215 = vmatmul.mubr.bf16.gmra.mrb[8].mxu1 %v3445_v2 }
 0x18e   :  { %v1602_v32 = vpack.c.bf16 %v1448_v15, %v1446_v28  ;;  %v989_v5 = vpop.f32.mrb[76].mxu0  ;;  %v1449_v33 = vsel %vm1193_vm11, %v986_v1, %v1321_v43  ;;  %2224 = vmatprep.mubr.bf16.mxu1 %v3446_v3  ;;  %v3454_v3 = vld [vmem:[%s4622_s3 + $0xe0] ss:$16 sps:$4 sm:$0xff]   ;;  %v3455_v28 = vld [vmem:[%s4622_s3 + $0x104] ss:$16 sps:$4 sm:$0xff]  }
 0x18f   :  { %v990_v0 = vadd.f32 %v989_v5, %v366_v29  ;;  %v991_v46 = vpop.f32.mrb[77].mxu0  ;;  %v1603_v34 = vpack.c.bf16 %v1449_v33, %v1447_v30  ;;  %v396_v5 = vpop.permute.xlu0 %395 }
 0x190   :  { %v992_v58 = vadd.f32 %v991_v46, %v366_v29  ;;  %v993_v39 = vpop.f32.mrb[78].mxu0 }
 0x191   :  { %v1322_v18 = vmul.f32 0.2, %v990_v0  ;;  %v994_v9 = vadd.f32 %v993_v39, %v371_v37  ;;  %v995_v40 = vpop.f32.mrb[79].mxu0  ;;  %2339 = vmatprep.subr.bf16.mxu1 %v1603_v34  ;;  %vm1194_vm12 = vcmp.gt.f32.partialorder %v990_v0, 0.0  ;;  %v401_v39 = vpop.permute.xlu1 %400 }
 0x192   :  { %v1323_v44 = vmul.f32 0.2, %v992_v58  ;;  %v996_v31 = vadd.f32 %v995_v40, %v371_v37  ;;  %2340 = vmatpush1.bf16.msra.mxu1 %v1602_v32  ;;  %vm1195_vm13 = vcmp.gt.f32.partialorder %v992_v58, 0.0 }
 0x193   :  { %vm1196_vm14 = vcmp.gt.f32.partialorder %v994_v9, 0.0  ;;  %v1324_v49 = vmul.f32 0.2, %v994_v9  ;;  %v1450_v13 = vsel %vm1194_vm12, %v990_v0, %v1322_v18 }
 0x194   :  { %vm1197_vm15 = vcmp.gt.f32.partialorder %v996_v31, 0.0  ;;  %v1325_v7 = vmul.f32 0.2, %v996_v31  ;;  %v1451_v35 = vsel %vm1195_vm13, %v992_v58, %v1323_v44 }
 0x195   :  { %v1452_v48 = vsel %vm1196_vm14, %v994_v9, %v1324_v49  ;;  %2225 = vmatmul.mubr.bf16.gmra.mrb[12].mxu1 %v3448_v45 }
 0x196   :  { %v1604_v50 = vpack.c.bf16 %v1452_v48, %v1450_v13  ;;  %v999_v51 = vpop.f32.mrb[80].mxu0  ;;  %v1453_v53 = vsel %vm1197_vm15, %v996_v31, %v1325_v7  ;;  %2234 = vmatprep.mubr.bf16.mxu1 %v3449_v47  ;;  %v3457_v47 = vld [vmem:[%s4622_s3 + $0x100] ss:$16 sps:$4 sm:$0xff]   ;;  %v3458_v13 = vld [vmem:[%s4622_s3 + $0x124] ss:$16 sps:$4 sm:$0xff]  }
 0x197   :  { %v1000_v52 = vadd.f32 %v999_v51, %v376_v63  ;;  %v1001_v20 = vpop.f32.mrb[81].mxu0  ;;  %v1605_v8 = vpack.c.bf16 %v1453_v53, %v1451_v35  ;;  %v406_v51 = vpop.permute.xlu0 %405 }
 0x198   :  { %v1002_v55 = vadd.f32 %v1001_v20, %v376_v63  ;;  %v1003_v56 = vpop.f32.mrb[82].mxu0 }
 0x199   :  { %v1326_v57 = vmul.f32 0.2, %v1000_v52  ;;  %v1004_v61 = vadd.f32 %v1003_v56, %v381_v19  ;;  %v1005_v62 = vpop.f32.mrb[83].mxu0  ;;  %2341 = vmatprep.subr.bf16.mxu1 %v1605_v8  ;;  %vm1198_vm0 = vcmp.gt.f32.partialorder %v1000_v52, 0.0  ;;  %v411_v56 = vpop.permute.xlu1 %410 }
 0x19a   :  { %v1327_v4 = vmul.f32 0.2, %v1002_v55  ;;  %v1006_v54 = vadd.f32 %v1005_v62, %v381_v19  ;;  %2342 = vmatpush1.bf16.msra.mxu1 %v1604_v50  ;;  %vm1199_vm1 = vcmp.gt.f32.partialorder %v1002_v55, 0.0 }
 0x19b   :  { %vm1200_vm2 = vcmp.gt.f32.partialorder %v1004_v61, 0.0  ;;  %v1328_v38 = vmul.f32 0.2, %v1004_v61  ;;  %v1454_v23 = vsel %vm1198_vm0, %v1000_v52, %v1326_v57 }
 0x19c   :  { %vm1201_vm3 = vcmp.gt.f32.partialorder %v1006_v54, 0.0  ;;  %v1329_v10 = vmul.f32 0.2, %v1006_v54  ;;  %v1455_v60 = vsel %vm1199_vm1, %v1002_v55, %v1327_v4 }
 0x19d   :  { %v1456_v11 = vsel %vm1200_vm2, %v1004_v61, %v1328_v38  ;;  %2235 = vmatmul.mubr.bf16.gmra.mrb[16].mxu1 %v3451_v36 }
 0x19e   :  { %v1606_v16 = vpack.c.bf16 %v1456_v11, %v1454_v23  ;;  %v1009_v59 = vpop.f32.mrb[84].mxu0  ;;  %v1457_v42 = vsel %vm1201_vm3, %v1006_v54, %v1329_v10  ;;  %2244 = vmatprep.mubr.bf16.mxu1 %v3452_v6  ;;  %v3460_v6 = vld [vmem:[%s4622_s3 + $0x120] ss:$16 sps:$4 sm:$0xff]   ;;  %v3461_v23 = vld [vmem:[%s4622_s3 + $0x144] ss:$16 sps:$4 sm:$0xff]  }
 0x19f   :  { %v1010_v41 = vadd.f32 %v1009_v59, %v386_v14  ;;  %v1011_v12 = vpop.f32.mrb[85].mxu0  ;;  %v1607_v17 = vpack.c.bf16 %v1457_v42, %v1455_v60  ;;  %v416_v59 = vpop.permute.xlu0 %415 }
 0x1a0   :  { %v1012_v22 = vadd.f32 %v1011_v12, %v386_v14  ;;  %v1013_v24 = vpop.f32.mrb[86].mxu0 }
 0x1a1   :  { %v1330_v26 = vmul.f32 0.2, %v1010_v41  ;;  %v1014_v25 = vadd.f32 %v1013_v24, %v391_v21  ;;  %v1015_v1 = vpop.f32.mrb[87].mxu0  ;;  %2343 = vmatprep.subr.bf16.mxu1 %v1607_v17  ;;  %vm1202_vm4 = vcmp.gt.f32.partialorder %v1010_v41, 0.0  ;;  %v421_v24 = vpop.permute.xlu1 %420 }
 0x1a2   :  { %v1331_v2 = vmul.f32 0.2, %v1012_v22  ;;  %v1016_v27 = vadd.f32 %v1015_v1, %v391_v21  ;;  %2344 = vmatpush1.bf16.msra.mxu1 %v1606_v16  ;;  %vm1203_vm5 = vcmp.gt.f32.partialorder %v1012_v22, 0.0 }
 0x1a3   :  { %vm1204_vm6 = vcmp.gt.f32.partialorder %v1014_v25, 0.0  ;;  %v1332_v43 = vmul.f32 0.2, %v1014_v25  ;;  %v1458_v29 = vsel %vm1202_vm4, %v1010_v41, %v1330_v26 }
 0x1a4   :  { %vm1205_vm7 = vcmp.gt.f32.partialorder %v1016_v27, 0.0  ;;  %v1333_v15 = vmul.f32 0.2, %v1016_v27  ;;  %v1459_v0 = vsel %vm1203_vm5, %v1012_v22, %v1331_v2 }
 0x1a5   :  { %v1460_v32 = vsel %vm1204_vm6, %v1014_v25, %v1332_v43  ;;  %2245 = vmatmul.mubr.bf16.gmra.mrb[20].mxu1 %v3454_v3 }
 0x1a6   :  { %v1608_v30 = vpack.c.bf16 %v1460_v32, %v1458_v29  ;;  %v1019_v33 = vpop.f32.mrb[88].mxu0  ;;  %v1461_v46 = vsel %vm1205_vm7, %v1016_v27, %v1333_v15  ;;  %2254 = vmatprep.mubr.bf16.mxu1 %v3455_v28  ;;  %v3463_v28 = vld [vmem:[%s4622_s3 + $0x140] ss:$16 sps:$4 sm:$0xff]   ;;  %v3464_v29 = vld [vmem:[%s4622_s3 + $0x164] ss:$16 sps:$4 sm:$0xff]  }
 0x1a7   :  { %v1020_v34 = vadd.f32 %v1019_v33, %v396_v5  ;;  %v1021_v37 = vpop.f32.mrb[89].mxu0  ;;  %v1609_v58 = vpack.c.bf16 %v1461_v46, %v1459_v0  ;;  %v426_v33 = vpop.permute.xlu0 %425 }
 0x1a8   :  { %v1022_v18 = vadd.f32 %v1021_v37, %v396_v5  ;;  %v1023_v9 = vpop.f32.mrb[90].mxu0 }
 0x1a9   :  { %v1334_v40 = vmul.f32 0.2, %v1020_v34  ;;  %v1024_v44 = vadd.f32 %v1023_v9, %v401_v39  ;;  %v1025_v31 = vpop.f32.mrb[91].mxu0  ;;  %2345 = vmatprep.subr.bf16.mxu1 %v1609_v58  ;;  %vm1206_vm8 = vcmp.gt.f32.partialorder %v1020_v34, 0.0  ;;  %v431_v9 = vpop.permute.xlu1 %430 }
 0x1aa   :  { %v1335_v45 = vmul.f32 0.2, %v1022_v18  ;;  %v1026_v49 = vadd.f32 %v1025_v31, %v401_v39  ;;  %2346 = vmatpush1.bf16.msra.mxu1 %v1608_v30  ;;  %vm1207_vm9 = vcmp.gt.f32.partialorder %v1022_v18, 0.0 }
 0x1ab   :  { %vm1208_vm10 = vcmp.gt.f32.partialorder %v1024_v44, 0.0  ;;  %v1336_v7 = vmul.f32 0.2, %v1024_v44  ;;  %v1462_v63 = vsel %vm1206_vm8, %v1020_v34, %v1334_v40 }
 0x1ac   :  { %vm1209_vm11 = vcmp.gt.f32.partialorder %v1026_v49, 0.0  ;;  %v1337_v48 = vmul.f32 0.2, %v1026_v49  ;;  %v1463_v52 = vsel %vm1207_vm9, %v1022_v18, %v1335_v45 }
 0x1ad   :  { %v1464_v50 = vsel %vm1208_vm10, %v1024_v44, %v1336_v7  ;;  %2255 = vmatmul.mubr.bf16.gmra.mrb[24].mxu1 %v3457_v47 }
 0x1ae   :  { %v1610_v35 = vpack.c.bf16 %v1464_v50, %v1462_v63  ;;  %v1029_v53 = vpop.f32.mrb[92].mxu0  ;;  %v1465_v20 = vsel %vm1209_vm11, %v1026_v49, %v1337_v48  ;;  %2264 = vmatprep.mubr.bf16.mxu1 %v3458_v13  ;;  %v3466_v13 = vld [vmem:[%s4622_s3 + $0x160] ss:$16 sps:$4 sm:$0xff]   ;;  %v3467_v63 = vld [vmem:[%s4622_s3 + $0x184] ss:$16 sps:$4 sm:$0xff]  }
 0x1af   :  { %v1030_v8 = vadd.f32 %v1029_v53, %v406_v51  ;;  %v1031_v19 = vpop.f32.mrb[93].mxu0  ;;  %v1611_v55 = vpack.c.bf16 %v1465_v20, %v1463_v52  ;;  %v436_v53 = vpop.permute.xlu0 %435 }
 0x1b0   :  { %v1032_v57 = vadd.f32 %v1031_v19, %v406_v51  ;;  %v1033_v61 = vpop.f32.mrb[94].mxu0 }
 0x1b1   :  { %v1338_v62 = vmul.f32 0.2, %v1030_v8  ;;  %v1034_v4 = vadd.f32 %v1033_v61, %v411_v56  ;;  %v1035_v54 = vpop.f32.mrb[95].mxu0  ;;  %2347 = vmatprep.subr.bf16.mxu1 %v1611_v55  ;;  %vm1210_vm12 = vcmp.gt.f32.partialorder %v1030_v8, 0.0  ;;  %v441_v61 = vpop.permute.xlu1 %440 }
 0x1b2   :  { %v1339_v36 = vmul.f32 0.2, %v1032_v57  ;;  %v1036_v38 = vadd.f32 %v1035_v54, %v411_v56  ;;  %2348 = vmatpush1.bf16.msra.mxu1 %v1610_v35  ;;  %vm1211_vm13 = vcmp.gt.f32.partialorder %v1032_v57, 0.0 }
 0x1b3   :  { %vm1212_vm14 = vcmp.gt.f32.partialorder %v1034_v4, 0.0  ;;  %v1340_v10 = vmul.f32 0.2, %v1034_v4  ;;  %v1466_v14 = vsel %vm1210_vm12, %v1030_v8, %v1338_v62 }
 0x1b4   :  { %vm1213_vm15 = vcmp.gt.f32.partialorder %v1036_v38, 0.0  ;;  %v1341_v11 = vmul.f32 0.2, %v1036_v38  ;;  %v1467_v41 = vsel %vm1211_vm13, %v1032_v57, %v1339_v36 }
 0x1b5   :  { %v1468_v16 = vsel %vm1212_vm14, %v1034_v4, %v1340_v10  ;;  %2265 = vmatmul.mubr.bf16.gmra.mrb[28].mxu1 %v3460_v6 }
 0x1b6   :  { %v1612_v60 = vpack.c.bf16 %v1468_v16, %v1466_v14  ;;  %v1039_v42 = vpop.f32.mrb[96].mxu0  ;;  %v1469_v12 = vsel %vm1213_vm15, %v1036_v38, %v1341_v11  ;;  %2274 = vmatprep.mubr.bf16.mxu1 %v3461_v23  ;;  %v3469_v23 = vld [vmem:[%s4622_s3 + $0x180] ss:$16 sps:$4 sm:$0xff]   ;;  %v3470_v14 = vld [vmem:[%s4622_s3 + $0x1a4] ss:$16 sps:$4 sm:$0xff]  }
 0x1b7   :  { %v1040_v17 = vadd.f32 %v1039_v42, %v416_v59  ;;  %v1041_v21 = vpop.f32.mrb[97].mxu0  ;;  %v1613_v22 = vpack.c.bf16 %v1469_v12, %v1467_v41  ;;  %v446_v42 = vpop.permute.xlu0 %445 }
 0x1b8   :  { %v1042_v26 = vadd.f32 %v1041_v21, %v416_v59  ;;  %v1043_v25 = vpop.f32.mrb[98].mxu0 }
 0x1b9   :  { %v1342_v1 = vmul.f32 0.2, %v1040_v17  ;;  %v1044_v2 = vadd.f32 %v1043_v25, %v421_v24  ;;  %v1045_v27 = vpop.f32.mrb[99].mxu0  ;;  %2349 = vmatprep.subr.bf16.mxu1 %v1613_v22  ;;  %vm1214_vm0 = vcmp.gt.f32.partialorder %v1040_v17, 0.0  ;;  %v451_v25 = vpop.permute.xlu1 %450 }
 0x1ba   :  { %v1343_v3 = vmul.f32 0.2, %v1042_v26  ;;  %v1046_v43 = vadd.f32 %v1045_v27, %v421_v24  ;;  %2350 = vmatpush1.bf16.msra.mxu1 %v1612_v60  ;;  %vm1215_vm1 = vcmp.gt.f32.partialorder %v1042_v26, 0.0 }
 0x1bb   :  { %vm1216_vm2 = vcmp.gt.f32.partialorder %v1044_v2, 0.0  ;;  %v1344_v15 = vmul.f32 0.2, %v1044_v2  ;;  %v1470_v5 = vsel %vm1214_vm0, %v1040_v17, %v1342_v1 }
 0x1bc   :  { %vm1217_vm3 = vcmp.gt.f32.partialorder %v1046_v43, 0.0  ;;  %v1345_v32 = vmul.f32 0.2, %v1046_v43  ;;  %v1471_v34 = vsel %vm1215_vm1, %v1042_v26, %v1343_v3 }
 0x1bd   :  { %v1472_v30 = vsel %vm1216_vm2, %v1044_v2, %v1344_v15  ;;  %2275 = vmatmul.mubr.bf16.gmra.mrb[32].mxu1 %v3463_v28 }
 0x1be   :  { %v1614_v0 = vpack.c.bf16 %v1472_v30, %v1470_v5  ;;  %v1049_v46 = vpop.f32.mrb[100].mxu0  ;;  %v1473_v37 = vsel %vm1217_vm3, %v1046_v43, %v1345_v32  ;;  %2284 = vmatprep.mubr.bf16.mxu1 %v3464_v29  ;;  %v3472_v29 = vld [vmem:[%s4622_s3 + $0x1a0] ss:$16 sps:$4 sm:$0xff]   ;;  %v3473_v5 = vld [vmem:[%s4622_s3 + $0x1c4] ss:$16 sps:$4 sm:$0xff]  }
 0x1bf   :  { %v1050_v58 = vadd.f32 %v1049_v46, %v426_v33  ;;  %v1051_v39 = vpop.f32.mrb[101].mxu0  ;;  %v1615_v18 = vpack.c.bf16 %v1473_v37, %v1471_v34 }
 0x1c0   :  { %v1052_v40 = vadd.f32 %v1051_v39, %v426_v33  ;;  %v1053_v44 = vpop.f32.mrb[102].mxu0 }
 0x1c1   :  { %v1346_v31 = vmul.f32 0.2, %v1050_v58  ;;  %v1054_v45 = vadd.f32 %v1053_v44, %v431_v9  ;;  %v1055_v49 = vpop.f32.mrb[103].mxu0  ;;  %2351 = vmatprep.subr.bf16.mxu1 %v1615_v18  ;;  %vm1218_vm4 = vcmp.gt.f32.partialorder %v1050_v58, 0.0  ;;  %v461_v44 = vpop.permute.xlu1 %460 }
 0x1c2   :  { %v1347_v47 = vmul.f32 0.2, %v1052_v40  ;;  %v1056_v7 = vadd.f32 %v1055_v49, %v431_v9  ;;  %2352 = vmatpush1.bf16.msra.mxu1 %v1614_v0  ;;  %vm1219_vm5 = vcmp.gt.f32.partialorder %v1052_v40, 0.0 }
 0x1c3   :  { %vm1220_vm6 = vcmp.gt.f32.partialorder %v1054_v45, 0.0  ;;  %v1348_v48 = vmul.f32 0.2, %v1054_v45  ;;  %v1474_v51 = vsel %vm1218_vm4, %v1050_v58, %v1346_v31  ;;  %v456_v58 = vpop.permute.xlu0 %455 }
 0x1c4   :  { %vm1221_vm7 = vcmp.gt.f32.partialorder %v1056_v7, 0.0  ;;  %v1349_v50 = vmul.f32 0.2, %v1056_v7  ;;  %v1475_v8 = vsel %vm1219_vm5, %v1052_v40, %v1347_v47 }
 0x1c5   :  { %v1476_v35 = vsel %vm1220_vm6, %v1054_v45, %v1348_v48  ;;  %2285 = vmatmul.mubr.bf16.gmra.mrb[36].mxu1 %v3466_v13  ;;  %v3475_v13 = vld [vmem:[%s4622_s3 + $0x1c0] ss:$16 sps:$4 sm:$0xff]  }
 0x1c6   :  { %v1616_v52 = vpack.c.bf16 %v1476_v35, %v1474_v51  ;;  %v1059_v20 = vpop.f32.mrb[104].mxu0  ;;  %v1477_v19 = vsel %vm1221_vm7, %v1056_v7, %v1349_v50  ;;  %2294 = vmatprep.mubr.bf16.mxu1 %v3467_v63  ;;  %v3476_v50 = vld [vmem:[%s4622_s3 + $0x1e4] ss:$16 sps:$4 sm:$0xff]  }
 0x1c7   :  { %v1060_v55 = vadd.f32 %v1059_v20, %v436_v53  ;;  %v1061_v56 = vpop.f32.mrb[105].mxu0  ;;  %v1617_v57 = vpack.c.bf16 %v1477_v19, %v1475_v8  ;;  %v466_v20 = vpop.permute.xlu0 %465 }
 0x1c8   :  { %v1062_v62 = vadd.f32 %v1061_v56, %v436_v53  ;;  %v1063_v4 = vpop.f32.mrb[106].mxu0 }
 0x1c9   :  { %v1350_v54 = vmul.f32 0.2, %v1060_v55  ;;  %v1064_v36 = vadd.f32 %v1063_v4, %v441_v61  ;;  %v1065_v38 = vpop.f32.mrb[107].mxu0  ;;  %2353 = vmatprep.subr.bf16.mxu1 %v1617_v57  ;;  %vm1222_vm8 = vcmp.gt.f32.partialorder %v1060_v55, 0.0  ;;  %v471_v4 = vpop.permute.xlu1 %470 }
 0x1ca   :  { %v1351_v6 = vmul.f32 0.2, %v1062_v62  ;;  %v1066_v10 = vadd.f32 %v1065_v38, %v441_v61  ;;  %2354 = vmatpush1.bf16.msra.mxu1 %v1616_v52  ;;  %vm1223_vm9 = vcmp.gt.f32.partialorder %v1062_v62, 0.0 }
 0x1cb   :  { %vm1224_vm10 = vcmp.gt.f32.partialorder %v1064_v36, 0.0  ;;  %v1352_v11 = vmul.f32 0.2, %v1064_v36  ;;  %v1478_v59 = vsel %vm1222_vm8, %v1060_v55, %v1350_v54 }
 0x1cc   :  { %vm1225_vm11 = vcmp.gt.f32.partialorder %v1066_v10, 0.0  ;;  %v1353_v16 = vmul.f32 0.2, %v1066_v10  ;;  %v1479_v17 = vsel %vm1223_vm9, %v1062_v62, %v1351_v6 }
 0x1cd   :  { %v1480_v60 = vsel %vm1224_vm10, %v1064_v36, %v1352_v11  ;;  %2295 = vmatmul.mubr.bf16.gmra.mrb[40].mxu1 %v3469_v23  ;;  %v3478_v23 = vld [vmem:[%s4622_s3 + $0x1e0] ss:$16 sps:$4 sm:$0xff]  }
 0x1ce   :  { %v1618_v41 = vpack.c.bf16 %v1480_v60, %v1478_v59  ;;  %v1069_v12 = vpop.f32.mrb[108].mxu0  ;;  %v1481_v21 = vsel %vm1225_vm11, %v1066_v10, %v1353_v16  ;;  %2304 = vmatprep.mubr.bf16.mxu1 %v3470_v14  ;;  %v3481_v16 = vld [vmem:[%s4622_s3 + $0xc] ss:$16 sps:$4 sm:$0xff]  }
 0x1cf   :  { %v1070_v22 = vadd.f32 %v1069_v12, %v446_v42  ;;  %v1071_v24 = vpop.f32.mrb[109].mxu0  ;;  %v1619_v26 = vpack.c.bf16 %v1481_v21, %v1479_v17  ;;  %v476_v12 = vpop.permute.xlu0 %475 }
 0x1d0   :  { %v1072_v1 = vadd.f32 %v1071_v24, %v446_v42  ;;  %v1073_v2 = vpop.f32.mrb[110].mxu0 }
 0x1d1   :  { %v1354_v27 = vmul.f32 0.2, %v1070_v22  ;;  %v1074_v3 = vadd.f32 %v1073_v2, %v451_v25  ;;  %v1075_v43 = vpop.f32.mrb[111].mxu0  ;;  %2355 = vmatprep.subr.bf16.mxu1 %v1619_v26  ;;  %vm1226_vm12 = vcmp.gt.f32.partialorder %v1070_v22, 0.0  ;;  %v481_v2 = vpop.permute.xlu1 %480 }
 0x1d2   :  { %v1355_v28 = vmul.f32 0.2, %v1072_v1  ;;  %v1076_v15 = vadd.f32 %v1075_v43, %v451_v25  ;;  %2356 = vmatpush1.bf16.msra.mxu1 %v1618_v41  ;;  %vm1227_vm13 = vcmp.gt.f32.partialorder %v1072_v1, 0.0 }
 0x1d3   :  { %vm1228_vm14 = vcmp.gt.f32.partialorder %v1074_v3, 0.0  ;;  %v1356_v32 = vmul.f32 0.2, %v1074_v3  ;;  %v1482_v33 = vsel %vm1226_vm12, %v1070_v22, %v1354_v27 }
 0x1d4   :  { %vm1229_vm15 = vcmp.gt.f32.partialorder %v1076_v15, 0.0  ;;  %v1357_v30 = vmul.f32 0.2, %v1076_v15  ;;  %v1483_v34 = vsel %vm1227_vm13, %v1072_v1, %v1355_v28 }
 0x1d5   :  { %v1484_v0 = vsel %vm1228_vm14, %v1074_v3, %v1356_v32  ;;  %2305 = vmatmul.mubr.bf16.gmra.mrb[44].mxu1 %v3472_v29 }
 0x1d6   :  { %v1620_v46 = vpack.c.bf16 %v1484_v0, %v1482_v33  ;;  %v1485_v37 = vsel %vm1229_vm15, %v1076_v15, %v1357_v30  ;;  %v1079_v39 = vpop.f32.mrb[112].mxu0  ;;  %2314 = vmatprep.mubr.bf16.mxu1 %v3473_v5 }
 0x1d7   :  { %v1621_v18 = vpack.c.bf16 %v1485_v37, %v1483_v34  ;;  %v1080_v9 = vadd.f32 %v1079_v39, %v456_v58  ;;  %v1081_v40 = vpop.f32.mrb[113].mxu0 }
 0x1d8   :  { %v1082_v31 = vadd.f32 %v1081_v40, %v456_v58  ;;  %v1083_v45 = vpop.f32.mrb[114].mxu0 }
 0x1d9   :  { %2357 = vmatprep.subr.bf16.mxu1 %v1621_v18  ;;  %v1358_v49 = vmul.f32 0.2, %v1080_v9  ;;  %v1084_v47 = vadd.f32 %v1083_v45, %v461_v44  ;;  %v1085_v7 = vpop.f32.mrb[115].mxu0  ;;  %vm1230_vm0 = vcmp.gt.f32.partialorder %v1080_v9, 0.0 }
 0x1da   :  { %2358 = vmatpush1.bf16.msra.mxu1 %v1620_v46  ;;  %v1359_v48 = vmul.f32 0.2, %v1082_v31  ;;  %v1086_v63 = vadd.f32 %v1085_v7, %v461_v44  ;;  %vm1231_vm1 = vcmp.gt.f32.partialorder %v1082_v31, 0.0  ;;  %v486_v46 = vpop.permute.xlu0 %485  ;;  %v491_v44 = vpop.permute.xlu1 %490 }
 0x1db   :  { %vm1232_vm2 = vcmp.gt.f32.partialorder %v1084_v47, 0.0  ;;  %v1360_v51 = vmul.f32 0.2, %v1084_v47  ;;  %v1486_v53 = vsel %vm1230_vm0, %v1080_v9, %v1358_v49 }
 0x1dc   :  { %vm1233_vm3 = vcmp.gt.f32.partialorder %v1086_v63, 0.0  ;;  %v1361_v35 = vmul.f32 0.2, %v1086_v63  ;;  %v1487_v55 = vsel %vm1231_vm1, %v1082_v31, %v1359_v48 }
 0x1dd   :  { %v1488_v52 = vsel %vm1232_vm2, %v1084_v47, %v1360_v51  ;;  %2315 = vmatmul.mubr.bf16.gmra.mrb[48].mxu1 %v3475_v13 }
 0x1de   :  { %v1622_v8 = vpack.c.bf16 %v1488_v52, %v1486_v53  ;;  %v1089_v19 = vpop.f32.mrb[116].mxu0  ;;  %v1489_v56 = vsel %vm1233_vm3, %v1086_v63, %v1361_v35  ;;  %2324 = vmatprep.mubr.bf16.mxu1 %v3476_v50 }
 0x1df   :  { %v1090_v57 = vadd.f32 %v1089_v19, %v466_v20  ;;  %v1091_v61 = vpop.f32.mrb[117].mxu0  ;;  %v1623_v62 = vpack.c.bf16 %v1489_v56, %v1487_v55  ;;  %v3479_v19 = vld [vmem:[%s4622_s3 + $0x8] ss:$16 sps:$4 sm:$0xff]   ;;  %v3482_v55 = vld [vmem:[%s4622_s3 + $0x2c] ss:$16 sps:$4 sm:$0xff]  }
 0x1e0   :  { %v1092_v54 = vadd.f32 %v1091_v61, %v466_v20  ;;  %v1093_v36 = vpop.f32.mrb[118].mxu0  ;;  %v3484_v56 = vld [vmem:[%s4622_s3 + $0x28] ss:$16 sps:$4 sm:$0xff]  }
 0x1e1   :  { %v1362_v38 = vmul.f32 0.2, %v1090_v57  ;;  %v1094_v6 = vadd.f32 %v1093_v36, %v471_v4  ;;  %v1095_v10 = vpop.f32.mrb[119].mxu0  ;;  %2359 = vmatprep.subr.bf16.mxu1 %v1623_v62  ;;  %vm1234_vm4 = vcmp.gt.f32.partialorder %v1090_v57, 0.0  ;;  %v3487_v61 = vld [vmem:[%s4622_s3 + $0x48] ss:$16 sps:$4 sm:$0xff]  }
 0x1e2   :  { %v1363_v11 = vmul.f32 0.2, %v1092_v54  ;;  %v1096_v14 = vadd.f32 %v1095_v10, %v471_v4  ;;  %2360 = vmatpush1.bf16.msra.mxu1 %v1622_v8  ;;  %vm1235_vm5 = vcmp.gt.f32.partialorder %v1092_v54, 0.0  ;;  %v3488_v62 = vld [vmem:[%s4622_s3 + $0x6c] ss:$16 sps:$4 sm:$0xff]  }
 0x1e3   :  { %vm1236_vm6 = vcmp.gt.f32.partialorder %v1094_v6, 0.0  ;;  %v1364_v59 = vmul.f32 0.2, %v1094_v6  ;;  %v1490_v42 = vsel %vm1234_vm4, %v1090_v57, %v1362_v38  ;;  %v3485_v57 = vld [vmem:[%s4622_s3 + $0x4c] ss:$16 sps:$4 sm:$0xff]  }
 0x1e4   :  { %vm1237_vm7 = vcmp.gt.f32.partialorder %v1096_v14, 0.0  ;;  %v1365_v60 = vmul.f32 0.2, %v1096_v14  ;;  %v1491_v22 = vsel %vm1235_vm5, %v1092_v54, %v1363_v11  ;;  %v3490_v4 = vld [vmem:[%s4622_s3 + $0x68] ss:$16 sps:$4 sm:$0xff]  }
 0x1e5   :  { %v1492_v41 = vsel %vm1236_vm6, %v1094_v6, %v1364_v59  ;;  %2325 = vmatmul.mubr.bf16.gmra.mrb[52].mxu1 %v3478_v23  ;;  %v3491_v54 = vld [vmem:[%s4622_s3 + $0x8c] ss:$16 sps:$4 sm:$0xff]   ;;  %v3493_v36 = vld [vmem:[%s4622_s3 + $0x88] ss:$16 sps:$4 sm:$0xff]  }
 0x1e6   :  { %v1624_v17 = vpack.c.bf16 %v1492_v41, %v1490_v42  ;;  %v1099_v21 = vpop.f32.mrb[120].mxu0  ;;  %v1493_v24 = vsel %vm1237_vm7, %v1096_v14, %v1365_v60  ;;  %2367 = vmatprep.mubr.bf16.mxu1 %v3481_v16  ;;  %v3494_v38 = vld [vmem:[%s4622_s3 + $0xac] ss:$16 sps:$4 sm:$0xff]   ;;  %v3496_v6 = vld [vmem:[%s4622_s3 + $0xa8] ss:$16 sps:$4 sm:$0xff]  }
 0x1e7   :  { %v1100_v26 = vadd.f32 %v1099_v21, %v476_v12  ;;  %v1101_v25 = vpop.f32.mrb[121].mxu0  ;;  %v1625_v1 = vpack.c.bf16 %v1493_v24, %v1491_v22  ;;  %v3497_v10 = vld [vmem:[%s4622_s3 + $0xcc] ss:$16 sps:$4 sm:$0xff]   ;;  %v3499_v23 = vld [vmem:[%s4622_s3 + $0xc8] ss:$16 sps:$4 sm:$0xff]  }
 0x1e8   :  { %v1102_v27 = vadd.f32 %v1101_v25, %v476_v12  ;;  %v1103_v3 = vpop.f32.mrb[122].mxu0  ;;  %v3500_v11 = vld [vmem:[%s4622_s3 + $0xec] ss:$16 sps:$4 sm:$0xff]   ;;  %v3502_v14 = vld [vmem:[%s4622_s3 + $0xe8] ss:$16 sps:$4 sm:$0xff]  }
 0x1e9   :  { %v1366_v43 = vmul.f32 0.2, %v1100_v26  ;;  %v1104_v28 = vadd.f32 %v1103_v3, %v481_v2  ;;  %v1105_v15 = vpop.f32.mrb[123].mxu0  ;;  %2361 = vmatprep.subr.bf16.mxu1 %v1625_v1  ;;  %vm1238_vm8 = vcmp.gt.f32.partialorder %v1100_v26, 0.0  ;;  %v3503_v16 = vld [vmem:[%s4622_s3 + $0x10c] ss:$16 sps:$4 sm:$0xff]  }
 0x1ea   :  { %v1367_v29 = vmul.f32 0.2, %v1102_v27  ;;  %v1106_v32 = vadd.f32 %v1105_v15, %v481_v2  ;;  %2362 = vmatpush1.bf16.msra.mxu1 %v1624_v17  ;;  %vm1239_vm9 = vcmp.gt.f32.partialorder %v1102_v27, 0.0  ;;  %v3505_v59 = vld [vmem:[%s4622_s3 + $0x108] ss:$16 sps:$4 sm:$0xff]  }
 0x1eb   :  { %vm1240_vm10 = vcmp.gt.f32.partialorder %v1104_v28, 0.0  ;;  %v1368_v5 = vmul.f32 0.2, %v1104_v28  ;;  %v1494_v33 = vsel %vm1238_vm8, %v1100_v26, %v1366_v43  ;;  %v3506_v60 = vld [vmem:[%s4622_s3 + $0x12c] ss:$16 sps:$4 sm:$0xff]  }
 0x1ec   :  { %vm1241_vm11 = vcmp.gt.f32.partialorder %v1106_v32, 0.0  ;;  %v1369_v30 = vmul.f32 0.2, %v1106_v32  ;;  %v1495_v58 = vsel %vm1239_vm9, %v1102_v27, %v1367_v29  ;;  %v3508_v42 = vld [vmem:[%s4622_s3 + $0x128] ss:$16 sps:$4 sm:$0xff]  }
 0x1ed   :  { %v1496_v0 = vsel %vm1240_vm10, %v1104_v28, %v1368_v5  ;;  %v3509_v41 = vld [vmem:[%s4622_s3 + $0x14c] ss:$16 sps:$4 sm:$0xff]   ;;  %v3511_v12 = vld [vmem:[%s4622_s3 + $0x148] ss:$16 sps:$4 sm:$0xff]  }
 0x1ee   :  { %v1626_v34 = vpack.c.bf16 %v1496_v0, %v1494_v33  ;;  %v1109_v37 = vpop.f32.mrb[124].mxu0  ;;  %v1497_v39 = vsel %vm1241_vm11, %v1106_v32, %v1369_v30  ;;  %v3512_v17 = vld [vmem:[%s4622_s3 + $0x16c] ss:$16 sps:$4 sm:$0xff]   ;;  %v3514_v24 = vld [vmem:[%s4622_s3 + $0x168] ss:$16 sps:$4 sm:$0xff]   ;;  %v1670_v0 = vpop.permute.xlu1 %1669 }
 0x1ef   :  { %v1110_v18 = vadd.f32 %v1109_v37, %v486_v46  ;;  %v1111_v9 = vpop.f32.mrb[125].mxu0  ;;  %v1627_v40 = vpack.c.bf16 %v1497_v39, %v1495_v58  ;;  %v3515_v25 = vld [vmem:[%s4622_s3 + $0x18c] ss:$16 sps:$4 sm:$0xff]   ;;  %v3517_v3 = vld [vmem:[%s4622_s3 + $0x188] ss:$16 sps:$4 sm:$0xff]  }
 0x1f0   :  { %v1112_v31 = vadd.f32 %v1111_v9, %v486_v46  ;;  %v1113_v45 = vpop.f32.mrb[126].mxu0  ;;  %v3518_v28 = vld [vmem:[%s4622_s3 + $0x1ac] ss:$16 sps:$4 sm:$0xff]   ;;  %v3520_v29 = vld [vmem:[%s4622_s3 + $0x1a8] ss:$16 sps:$4 sm:$0xff]   ;;  %v1665_v46 = vpop.permute.xlu0 %1664 }
 0x1f1   :  { %v1370_v49 = vmul.f32 0.2, %v1110_v18  ;;  %v1114_v47 = vadd.f32 %v1113_v45, %v491_v44  ;;  %v1115_v7 = vpop.f32.mrb[127].mxu0  ;;  %2363 = vmatprep.subr.bf16.mxu1 %v1627_v40  ;;  %vm1242_vm12 = vcmp.gt.f32.partialorder %v1110_v18, 0.0  ;;  %v3521_v32 = vld [vmem:[%s4622_s3 + $0x1cc] ss:$16 sps:$4 sm:$0xff]  }
 0x1f2   :  { %v1371_v13 = vmul.f32 0.2, %v1112_v31  ;;  %v1116_v48 = vadd.f32 %v1115_v7, %v491_v44  ;;  %2364 = vmatpush1.bf16.msra.mxu1 %v1626_v34  ;;  %vm1243_vm13 = vcmp.gt.f32.partialorder %v1112_v31, 0.0  ;;  %v3523_v5 = vld [vmem:[%s4622_s3 + $0x1c8] ss:$16 sps:$4 sm:$0xff]   ;;  %v1680_v34 = vpop.permute.xlu1 %1679 }
 0x1f3   :  { %vm1244_vm14 = vcmp.gt.f32.partialorder %v1114_v47, 0.0  ;;  %v1372_v63 = vmul.f32 0.2, %v1114_v47  ;;  %v1498_v51 = vsel %vm1242_vm12, %v1110_v18, %v1370_v49  ;;  %v3524_v30 = vld [vmem:[%s4622_s3 + $0x1ec] ss:$16 sps:$4 sm:$0xff]  }
 0x1f4   :  { %vm1245_vm15 = vcmp.gt.f32.partialorder %v1116_v48, 0.0  ;;  %v1373_v50 = vmul.f32 0.2, %v1116_v48  ;;  %v1499_v52 = vsel %vm1243_vm13, %v1112_v31, %v1371_v13  ;;  %v3526_v33 = vld [vmem:[%s4622_s3 + $0x1e8] ss:$16 sps:$4 sm:$0xff]   ;;  %v1675_v37 = vpop.permute.xlu0 %1674 }
 0x1f5   :  { %v1500_v35 = vsel %vm1244_vm14, %v1114_v47, %v1372_v63 }
 0x1f6   :  { %v1628_v53 = vpack.c.bf16 %v1500_v35, %v1498_v51  ;;  %v1501_v20 = vsel %vm1245_vm15, %v1116_v48, %v1373_v50  ;;  %v4469_v58 = vpop.permute.xlu1 %1689 }
 0x1f7   :  { %v1629_v8 = vpack.c.bf16 %v1501_v20, %v1499_v52 }
 0x1f8   :  { %v4471_v39 = vpop.permute.xlu0 %1684 }
 0x1f9   :  { %2365 = vmatprep.subr.bf16.mxu1 %v1629_v8 }
 0x1fa   :  { %2366 = vmatpush1.bf16.msra.mxu1 %v1628_v53  ;;  %v4473_v18 = vpop.permute.xlu1 %1699 }
 0x1fc   :  { %v4475_v9 = vpop.permute.xlu0 %1694 }
 0x1fd   :  { %2368 = vmatmul.mubr.bf16.vlgmr.msra.gmra.mrb[56].mxu1 %v3479_v19 }
 0x1fe   :  { %2377 = vmatprep.mubr.bf16.mxu1 %v3482_v55  ;;  %v4477_v40 = vpop.permute.xlu1 %1709 }
 0x200   :  { %v4479_v44 = vpop.permute.xlu0 %1704 }
 0x202   :  { %v4481_v31 = vpop.permute.xlu1 %1719 }
 0x204   :  { %v4483_v45 = vpop.permute.xlu0 %1714 }
 0x205   :  { %2378 = vmatmul.mubr.bf16.gmra.mrb[60].mxu1 %v3484_v56 }
 0x206   :  { %2387 = vmatprep.mubr.bf16.mxu1 %v3485_v57  ;;  %v4485_v49 = vpop.permute.xlu1 %1729 }
 0x208   :  { %v4487_v47 = vpop.permute.xlu0 %1724 }
 0x20a   :  { %v4489_v7 = vpop.permute.xlu1 %1739 }
 0x20c   :  { %v4491_v13 = vpop.permute.xlu0 %1734 }
 0x20d   :  { %2388 = vmatmul.mubr.bf16.gmra.mrb[0].mxu1 %v3487_v61 }
 0x20e   :  { %2397 = vmatprep.mubr.bf16.mxu1 %v3488_v62  ;;  %v4493_v48 = vpop.permute.xlu1 %1749 }
 0x210   :  { %v4495_v63 = vpop.permute.xlu0 %1744 }
 0x212   :  { %v4497_v50 = vpop.permute.xlu1 %1759 }
 0x214   :  { %v4499_v51 = vpop.permute.xlu0 %1754 }
 0x215   :  { %2398 = vmatmul.mubr.bf16.gmra.mrb[4].mxu1 %v3490_v4 }
 0x216   :  { %2407 = vmatprep.mubr.bf16.mxu1 %v3491_v54  ;;  %v2755_v35 = vpop.permute.xlu1 %2754 }
 0x218   :  { %v4501_v53 = vpop.permute.xlu0 %1764 }
 0x21d   :  { %2408 = vmatmul.mubr.bf16.gmra.mrb[8].mxu1 %v3493_v36 }
 0x21e   :  { %2417 = vmatprep.mubr.bf16.mxu1 %v3494_v38  ;;  %v2765_v38 = vpop.permute.xlu1 %2764 }
 0x225   :  { %2418 = vmatmul.mubr.bf16.gmra.mrb[12].mxu1 %v3496_v6 }
 0x226   :  { %2427 = vmatprep.mubr.bf16.mxu1 %v3497_v10 }
 0x22d   :  { %2428 = vmatmul.mubr.bf16.gmra.mrb[16].mxu1 %v3499_v23  ;;  %v2760_v23 = vpop.permute.xlu0 %2759 }
 0x22e   :  { %2437 = vmatprep.mubr.bf16.mxu1 %v3500_v11 }
 0x235   :  { %2438 = vmatmul.mubr.bf16.gmra.mrb[20].mxu1 %v3502_v14 }
 0x236   :  { %2447 = vmatprep.mubr.bf16.mxu1 %v3503_v16 }
 0x23d   :  { %2448 = vmatmul.mubr.bf16.gmra.mrb[24].mxu1 %v3505_v59 }
 0x23e   :  { %2457 = vmatprep.mubr.bf16.mxu1 %v3506_v60 }
 0x245   :  { %2458 = vmatmul.mubr.bf16.gmra.mrb[28].mxu1 %v3508_v42 }
 0x246   :  { %2467 = vmatprep.mubr.bf16.mxu1 %v3509_v41 }
 0x24d   :  { %2468 = vmatmul.mubr.bf16.gmra.mrb[32].mxu1 %v3511_v12 }
 0x24e   :  { %2477 = vmatprep.mubr.bf16.mxu1 %v3512_v17 }
 0x250   :  { %v2176_v21 = vpop.f32.mrb[128].mxu0 }
 0x251   :  { %v2178_v22 = vpop.f32.mrb[129].mxu0  ;;  %v2177_v52 = vadd.f32 %v2176_v21, %v1665_v46 }
 0x252   :  { %v2180_v26 = vpop.f32.mrb[130].mxu0  ;;  %v2179_v20 = vadd.f32 %v2178_v22, %v1665_v46 }
 0x253   :  { %v2182_v1 = vpop.f32.mrb[131].mxu0  ;;  %v2181_v19 = vadd.f32 %v2180_v26, %v1670_v0 }
 0x254   :  { %v2183_v57 = vadd.f32 %v2182_v1, %v1670_v0 }
 0x255   :  { %2478 = vmatmul.mubr.bf16.gmra.mrb[36].mxu1 %v3514_v24 }
 0x256   :  { %2487 = vmatprep.mubr.bf16.mxu1 %v3515_v25 }
 0x258   :  { %v4440_v2 = vpop.f32.mrb[132].mxu0 }
 0x259   :  { %v4442_v27 = vpop.f32.mrb[133].mxu0  ;;  %v2187_v60 = vadd.f32 %v4440_v2, %v1675_v37  ;;  %v2770_v2 = vpop.permute.xlu0 %2769 }
 0x25a   :  { %v4447_v43 = vpop.f32.mrb[134].mxu0  ;;  %v2189_v41 = vadd.f32 %v4442_v27, %v1675_v37 }
 0x25b   :  { %v4452_v15 = vpop.f32.mrb[135].mxu0  ;;  %v2191_v24 = vadd.f32 %v4447_v43, %v1680_v34 }
 0x25d   :  { %2488 = vmatmul.mubr.bf16.gmra.mrb[40].mxu1 %v3517_v3 }
 0x25e   :  { %2497 = vmatprep.mubr.bf16.mxu1 %v3518_v28  ;;  %v2775_v28 = vpop.permute.xlu1 %2774 }
 0x265   :  { %2498 = vmatmul.mubr.bf16.gmra.mrb[44].mxu1 %v3520_v29  ;;  %v2193_v29 = vadd.f32 %v4452_v15, %v1680_v34 }
 0x266   :  { %2507 = vmatprep.mubr.bf16.mxu1 %v3521_v32 }
 0x26d   :  { %2508 = vmatmul.mubr.bf16.gmra.mrb[48].mxu1 %v3523_v5 }
 0x26e   :  { %2517 = vmatprep.mubr.bf16.mxu1 %v3524_v30 }
 0x275   :  { %2518 = vmatmul.mubr.bf16.gmra.mrb[52].mxu1 %v3526_v33 }
 0x2d0   :  { %v2369_v8 = vpop.f32.mrb[56].mxu1 }
 0x2d1   :  { %v2370_v55 = vadd.f32 %v2369_v8, %v2177_v52  ;;  %v2371_v56 = vpop.f32.mrb[57].mxu1 }
 0x2d2   :  { %v2372_v61 = vadd.f32 %v2371_v56, %v2179_v20  ;;  %v2373_v62 = vpop.f32.mrb[58].mxu1 }
 0x2d3   :  { %vm2528_vm0 = vcmp.gt.f32.partialorder %v2370_v55, 0.0  ;;  %v2592_v4 = vmul.f32 0.2, %v2370_v55  ;;  %v2374_v54 = vadd.f32 %v2373_v62, %v2181_v19  ;;  %v2375_v36 = vpop.f32.mrb[59].mxu1 }
 0x2d4   :  { %vm2529_vm1 = vcmp.gt.f32.partialorder %v2372_v61, 0.0  ;;  %v2593_v6 = vmul.f32 0.2, %v2372_v61  ;;  %v2376_v10 = vadd.f32 %v2375_v36, %v2183_v57 }
 0x2d5   :  { %v2656_v11 = vsel %vm2528_vm0, %v2370_v55, %v2592_v4  ;;  %vm2530_vm2 = vcmp.gt.f32.partialorder %v2374_v54, 0.0  ;;  %v2594_v14 = vmul.f32 0.2, %v2374_v54  ;;  %v2785_v55 = vpop.permute.xlu1 %2784  ;;  %v2780_v4 = vpop.permute.xlu0 %2779 }
 0x2d6   :  { %v2657_v16 = vsel %vm2529_vm1, %v2372_v61, %v2593_v6  ;;  %vm2531_vm3 = vcmp.gt.f32.partialorder %v2376_v10, 0.0  ;;  %v2595_v59 = vmul.f32 0.2, %v2376_v10  ;;  %v2912_v12 = vmul.f32 %v2755_v35, %v2656_v11 }
 0x2d7   :  { %v2658_v42 = vsel %vm2530_vm2, %v2374_v54, %v2594_v14  ;;  %v2913_v26 = vmul.f32 %v2755_v35, %v2657_v16 }
 0x2d8   :  { %v2914_v17 = vmul.f32 %v2760_v23, %v2658_v42  ;;  %v2659_v21 = vsel %vm2531_vm3, %v2376_v10, %v2595_v59  ;;  %v2379_v22 = vpop.f32.mrb[60].mxu1 }
 0x2d9   :  { %v2915_v25 = vmul.f32 %v2760_v23, %v2659_v21  ;;  %v2380_v1 = vadd.f32 %v2379_v22, %v2187_v60  ;;  %v2381_v3 = vpop.f32.mrb[61].mxu1  ;;  %v4511_v21 = vpop.permute.xlu1 %2794 }
 0x2da   :  { %v2976_v32 = vadd.f32 %v2914_v17, %v2912_v12  ;;  %v2382_v5 = vadd.f32 %v2381_v3, %v2189_v41  ;;  %v2383_v30 = vpop.f32.mrb[62].mxu1 }
 0x2db   :  { %v3013_v33 = vadd.f32 %v2915_v25, %v2913_v26  ;;  %vm2532_vm4 = vcmp.gt.f32.partialorder %v2380_v1, 0.0  ;;  %v2596_v27 = vmul.f32 0.2, %v2380_v1  ;;  %v2384_v0 = vadd.f32 %v2383_v30, %v2191_v24  ;;  %v2385_v46 = vpop.f32.mrb[63].mxu1  ;;  %v2790_v26 = vpop.permute.xlu0 %2789 }
 0x2dc   :  { %vm2533_vm5 = vcmp.gt.f32.partialorder %v2382_v5, 0.0  ;;  %v2597_v37 = vmul.f32 0.2, %v2382_v5  ;;  %v2386_v52 = vadd.f32 %v2385_v46, %v2193_v29 }
 0x2dd   :  { %v2660_v43 = vsel %vm2532_vm4, %v2380_v1, %v2596_v27  ;;  %vm2534_vm6 = vcmp.gt.f32.partialorder %v2384_v0, 0.0  ;;  %v2598_v35 = vmul.f32 0.2, %v2384_v0 }
 0x2de   :  { %v2916_v20 = vmul.f32 %v2765_v38, %v2660_v43  ;;  %v2661_v8 = vsel %vm2533_vm5, %v2382_v5, %v2597_v37  ;;  %vm2535_vm7 = vcmp.gt.f32.partialorder %v2386_v52, 0.0  ;;  %v2599_v19 = vmul.f32 0.2, %v2386_v52 }
 0x2df   :  { %v2917_v15 = vmul.f32 %v2765_v38, %v2661_v8  ;;  %v2662_v34 = vsel %vm2534_vm6, %v2384_v0, %v2598_v35  ;;  %v4516_v35 = vpop.permute.xlu1 %2804 }
 0x2e0   :  { %v2977_v56 = vadd.f32 %v2976_v32, %v2916_v20  ;;  %v2918_v57 = vmul.f32 %v2770_v2, %v2662_v34  ;;  %v2663_v61 = vsel %vm2535_vm7, %v2386_v52, %v2599_v19  ;;  %v2389_v62 = vpop.f32.mrb[0].mxu1  ;;  %v2800_v19 = vpop.permute.xlu0 %2799 }
 0x2e1   :  { %v3014_v54 = vadd.f32 %v3013_v33, %v2917_v15  ;;  %v2919_v36 = vmul.f32 %v2770_v2, %v2663_v61  ;;  %v3259_v6 = vadd.f32 %v2389_v62, %v4471_v39  ;;  %v2391_v10 = vpop.f32.mrb[1].mxu1 }
 0x2e2   :  { %v2978_v23 = vadd.f32 %v2977_v56, %v2918_v57  ;;  %v3260_v11 = vadd.f32 %v2391_v10, %v4471_v39  ;;  %v2393_v14 = vpop.f32.mrb[2].mxu1 }
 0x2e3   :  { %v3015_v16 = vadd.f32 %v3014_v54, %v2919_v36  ;;  %vm2536_vm8 = vcmp.gt.f32.partialorder %v3259_v6, 0.0  ;;  %v2600_v59 = vmul.f32 0.2, %v3259_v6  ;;  %v3261_v38 = vadd.f32 %v2393_v14, %v4469_v58  ;;  %v2395_v60 = vpop.f32.mrb[3].mxu1 }
 0x2e4   :  { %vm2537_vm9 = vcmp.gt.f32.partialorder %v3260_v11, 0.0  ;;  %v2601_v42 = vmul.f32 0.2, %v3260_v11  ;;  %v3262_v41 = vadd.f32 %v2395_v60, %v4469_v58  ;;  %v2810_v60 = vpop.permute.xlu0 %2809 }
 0x2e5   :  { %v2664_v12 = vsel %vm2536_vm8, %v3259_v6, %v2600_v59  ;;  %vm2538_vm10 = vcmp.gt.f32.partialorder %v3261_v38, 0.0  ;;  %v2602_v17 = vmul.f32 0.2, %v3261_v38 }
 0x2e6   :  { %v2920_v22 = vmul.f32 %v2775_v28, %v2664_v12  ;;  %v2665_v24 = vsel %vm2537_vm9, %v3260_v11, %v2601_v42  ;;  %vm2539_vm11 = vcmp.gt.f32.partialorder %v3262_v41, 0.0  ;;  %v2603_v39 = vmul.f32 0.2, %v3262_v41 }
 0x2e7   :  { %v2921_v25 = vmul.f32 %v2775_v28, %v2665_v24  ;;  %v2666_v1 = vsel %vm2538_vm10, %v3261_v38, %v2602_v17 }
 0x2e8   :  { %v2979_v3 = vadd.f32 %v2978_v23, %v2920_v22  ;;  %v2922_v29 = vmul.f32 %v2780_v4, %v2666_v1  ;;  %v2667_v32 = vsel %vm2539_vm11, %v3262_v41, %v2603_v39  ;;  %v2399_v5 = vpop.f32.mrb[4].mxu1 }
 0x2e9   :  { %v3016_v30 = vadd.f32 %v3015_v16, %v2921_v25  ;;  %v2923_v2 = vmul.f32 %v2780_v4, %v2667_v32  ;;  %v3263_v58 = vadd.f32 %v2399_v5, %v4475_v9  ;;  %v2401_v33 = vpop.f32.mrb[5].mxu1 }
 0x2ea   :  { %v2980_v27 = vadd.f32 %v2979_v3, %v2922_v29  ;;  %v3264_v0 = vadd.f32 %v2401_v33, %v4475_v9  ;;  %v2403_v46 = vpop.f32.mrb[6].mxu1 }
 0x2eb   :  { %v3017_v37 = vadd.f32 %v3016_v30, %v2923_v2  ;;  %vm2540_vm12 = vcmp.gt.f32.partialorder %v3263_v58, 0.0  ;;  %v2604_v52 = vmul.f32 0.2, %v3263_v58  ;;  %v3265_v43 = vadd.f32 %v2403_v46, %v4473_v18  ;;  %v2405_v28 = vpop.f32.mrb[7].mxu1 }
 0x2ec   :  { %vm2541_vm13 = vcmp.gt.f32.partialorder %v3264_v0, 0.0  ;;  %v2605_v20 = vmul.f32 0.2, %v3264_v0  ;;  %v3266_v8 = vadd.f32 %v2405_v28, %v4473_v18  ;;  %v4520_v18 = vpop.permute.xlu1 %2814 }
 0x2ed   :  { %v2668_v15 = vsel %vm2540_vm12, %v3263_v58, %v2604_v52  ;;  %vm2542_vm14 = vcmp.gt.f32.partialorder %v3265_v43, 0.0  ;;  %v2606_v34 = vmul.f32 0.2, %v3265_v43  ;;  %v2820_v58 = vpop.permute.xlu0 %2819 }
 0x2ee   :  { %v2924_v56 = vmul.f32 %v2785_v55, %v2668_v15  ;;  %v2669_v57 = vsel %vm2541_vm13, %v3264_v0, %v2605_v20  ;;  %vm2543_vm15 = vcmp.gt.f32.partialorder %v3266_v8, 0.0  ;;  %v2607_v9 = vmul.f32 0.2, %v3266_v8 }
 0x2ef   :  { %v2925_v61 = vmul.f32 %v2785_v55, %v2669_v57  ;;  %v2670_v62 = vsel %vm2542_vm14, %v3265_v43, %v2606_v34 }
 0x2f0   :  { %v2981_v4 = vadd.f32 %v2980_v27, %v2924_v56  ;;  %v2926_v54 = vmul.f32 %v2790_v26, %v2670_v62  ;;  %v2671_v36 = vsel %vm2543_vm15, %v3266_v8, %v2607_v9  ;;  %v2409_v6 = vpop.f32.mrb[8].mxu1  ;;  %v4527_v29 = vpop.permute.xlu1 %2824 }
 0x2f1   :  { %v3018_v10 = vadd.f32 %v3017_v37, %v2925_v61  ;;  %v2927_v23 = vmul.f32 %v2790_v26, %v2671_v36  ;;  %v3267_v11 = vadd.f32 %v2409_v6, %v4479_v44  ;;  %v2411_v14 = vpop.f32.mrb[9].mxu1  ;;  %v4536_v61 = vpop.permute.xlu0 %2829 }
 0x2f2   :  { %v2982_v16 = vadd.f32 %v2981_v4, %v2926_v54  ;;  %v3268_v59 = vadd.f32 %v2411_v14, %v4479_v44  ;;  %v2413_v38 = vpop.f32.mrb[10].mxu1 }
 0x2f3   :  { %v3019_v42 = vadd.f32 %v3018_v10, %v2927_v23  ;;  %vm2544_vm0 = vcmp.gt.f32.partialorder %v3267_v11, 0.0  ;;  %v2608_v55 = vmul.f32 0.2, %v3267_v11  ;;  %v3269_v41 = vadd.f32 %v2413_v38, %v4477_v40  ;;  %v2415_v12 = vpop.f32.mrb[11].mxu1 }
 0x2f4   :  { %vm2545_vm1 = vcmp.gt.f32.partialorder %v3268_v59, 0.0  ;;  %v2609_v17 = vmul.f32 0.2, %v3268_v59  ;;  %v3270_v22 = vadd.f32 %v2415_v12, %v4477_v40  ;;  %v4533_v56 = vpop.permute.xlu1 %2834 }
 0x2f5   :  { %v2672_v24 = vsel %vm2544_vm0, %v3267_v11, %v2608_v55  ;;  %vm2546_vm2 = vcmp.gt.f32.partialorder %v3269_v41, 0.0  ;;  %v2610_v39 = vmul.f32 0.2, %v3269_v41 }
 0x2f6   :  { %v2928_v26 = vmul.f32 %v4511_v21, %v2672_v24  ;;  %v2673_v25 = vsel %vm2545_vm1, %v3268_v59, %v2609_v17  ;;  %vm2547_vm3 = vcmp.gt.f32.partialorder %v3270_v22, 0.0  ;;  %v2611_v44 = vmul.f32 0.2, %v3270_v22 }
 0x2f7   :  { %v2929_v1 = vmul.f32 %v4511_v21, %v2673_v25  ;;  %v2674_v3 = vsel %vm2546_vm2, %v3269_v41, %v2610_v39 }
 0x2f8   :  { %v2983_v32 = vadd.f32 %v2982_v16, %v2928_v26  ;;  %v2930_v5 = vmul.f32 %v2800_v19, %v2674_v3  ;;  %v2675_v30 = vsel %vm2547_vm3, %v3270_v22, %v2611_v44  ;;  %v2419_v2 = vpop.f32.mrb[12].mxu1  ;;  %v4542_v12 = vpop.permute.xlu1 %2844 }
 0x2f9   :  { %v3020_v33 = vadd.f32 %v3019_v42, %v2929_v1  ;;  %v2931_v40 = vmul.f32 %v2800_v19, %v2675_v30  ;;  %v3271_v27 = vadd.f32 %v2419_v2, %v4483_v45  ;;  %v2421_v0 = vpop.f32.mrb[13].mxu1 }
 0x2fa   :  { %v2984_v46 = vadd.f32 %v2983_v32, %v2930_v5  ;;  %v3272_v37 = vadd.f32 %v2421_v0, %v4483_v45  ;;  %v2423_v52 = vpop.f32.mrb[14].mxu1 }
 0x2fb   :  { %v3021_v43 = vadd.f32 %v3020_v33, %v2931_v40  ;;  %vm2548_vm4 = vcmp.gt.f32.partialorder %v3271_v27, 0.0  ;;  %v2612_v21 = vmul.f32 0.2, %v3271_v27  ;;  %v3273_v28 = vadd.f32 %v2423_v52, %v4481_v31  ;;  %v2425_v20 = vpop.f32.mrb[15].mxu1 }
 0x2fc   :  { %vm2549_vm5 = vcmp.gt.f32.partialorder %v3272_v37, 0.0  ;;  %v2613_v8 = vmul.f32 0.2, %v3272_v37  ;;  %v3274_v15 = vadd.f32 %v2425_v20, %v4481_v31 }
 0x2fd   :  { %v2676_v34 = vsel %vm2548_vm4, %v3271_v27, %v2612_v21  ;;  %vm2550_vm6 = vcmp.gt.f32.partialorder %v3273_v28, 0.0  ;;  %v2614_v19 = vmul.f32 0.2, %v3273_v28  ;;  %v4550_v27 = vpop.permute.xlu1 %2849 }
 0x2fe   :  { %v2932_v57 = vmul.f32 %v4516_v35, %v2676_v34  ;;  %v2677_v9 = vsel %vm2549_vm5, %v3272_v37, %v2613_v8  ;;  %vm2551_vm7 = vcmp.gt.f32.partialorder %v3274_v15, 0.0  ;;  %v2615_v45 = vmul.f32 0.2, %v3274_v15 }
 0x2ff   :  { %v2933_v62 = vmul.f32 %v4516_v35, %v2677_v9  ;;  %v2678_v4 = vsel %vm2550_vm6, %v3273_v28, %v2614_v19 }
 0x300   :  { %v2985_v54 = vadd.f32 %v2984_v46, %v2932_v57  ;;  %v2934_v36 = vmul.f32 %v2810_v60, %v2678_v4  ;;  %v2679_v6 = vsel %vm2551_vm7, %v3274_v15, %v2615_v45  ;;  %v2429_v10 = vpop.f32.mrb[16].mxu1 }
 0x301   :  { %v3022_v31 = vadd.f32 %v3021_v43, %v2933_v62  ;;  %v2935_v23 = vmul.f32 %v2810_v60, %v2679_v6  ;;  %v3275_v11 = vadd.f32 %v2429_v10, %v4487_v47  ;;  %v2431_v14 = vpop.f32.mrb[17].mxu1  ;;  %v4545_v60 = vpop.permute.xlu0 %2839 }
 0x302   :  { %v2986_v16 = vadd.f32 %v2985_v54, %v2934_v36  ;;  %v3276_v59 = vadd.f32 %v2431_v14, %v4487_v47  ;;  %v2433_v38 = vpop.f32.mrb[18].mxu1  ;;  %v4559_v45 = vpop.permute.xlu1 %2854 }
 0x303   :  { %v3023_v42 = vadd.f32 %v3022_v31, %v2935_v23  ;;  %vm2552_vm8 = vcmp.gt.f32.partialorder %v3275_v11, 0.0  ;;  %v2616_v55 = vmul.f32 0.2, %v3275_v11  ;;  %v3277_v41 = vadd.f32 %v2433_v38, %v4485_v49  ;;  %v2435_v35 = vpop.f32.mrb[19].mxu1 }
 0x304   :  { %vm2553_vm9 = vcmp.gt.f32.partialorder %v3276_v59, 0.0  ;;  %v2617_v17 = vmul.f32 0.2, %v3276_v59  ;;  %v3278_v22 = vadd.f32 %v2435_v35, %v4485_v49 }
 0x305   :  { %v2680_v24 = vsel %vm2552_vm8, %v3275_v11, %v2616_v55  ;;  %vm2554_vm10 = vcmp.gt.f32.partialorder %v3277_v41, 0.0  ;;  %v2618_v39 = vmul.f32 0.2, %v3277_v41  ;;  %v4553_v52 = vpop.permute.xlu0 %1769 }
 0x306   :  { %v2936_v47 = vmul.f32 %v4520_v18, %v2680_v24  ;;  %v2681_v26 = vsel %vm2553_vm9, %v3276_v59, %v2617_v17  ;;  %vm2555_vm11 = vcmp.gt.f32.partialorder %v3278_v22, 0.0  ;;  %v2619_v25 = vmul.f32 0.2, %v3278_v22  ;;  %v4569_v17 = vpop.permute.xlu1 %2859 }
 0x307   :  { %v2937_v44 = vmul.f32 %v4520_v18, %v2681_v26  ;;  %v2682_v1 = vsel %vm2554_vm10, %v3277_v41, %v2618_v39 }
 0x308   :  { %v2987_v3 = vadd.f32 %v2986_v16, %v2936_v47  ;;  %v2938_v32 = vmul.f32 %v2820_v58, %v2682_v1  ;;  %v2683_v5 = vsel %vm2555_vm11, %v3278_v22, %v2619_v25  ;;  %v2439_v30 = vpop.f32.mrb[20].mxu1 }
 0x309   :  { %v3024_v2 = vadd.f32 %v3023_v42, %v2937_v44  ;;  %v2939_v33 = vmul.f32 %v2820_v58, %v2683_v5  ;;  %v3279_v49 = vadd.f32 %v2439_v30, %v4491_v13  ;;  %v2441_v40 = vpop.f32.mrb[21].mxu1  ;;  %v4562_v6 = vpop.permute.xlu0 %1774 }
 0x30a   :  { %v2988_v0 = vadd.f32 %v2987_v3, %v2938_v32  ;;  %v3280_v46 = vadd.f32 %v2441_v40, %v4491_v13  ;;  %v2443_v37 = vpop.f32.mrb[22].mxu1 }
 0x30b   :  { %v3025_v43 = vadd.f32 %v3024_v2, %v2939_v33  ;;  %vm2556_vm12 = vcmp.gt.f32.partialorder %v3279_v49, 0.0  ;;  %v2620_v18 = vmul.f32 0.2, %v3279_v49  ;;  %v3281_v21 = vadd.f32 %v2443_v37, %v4489_v7  ;;  %v2445_v28 = vpop.f32.mrb[23].mxu1  ;;  %v4580_v37 = vpop.permute.xlu1 %2864 }
 0x30c   :  { %vm2557_vm13 = vcmp.gt.f32.partialorder %v3280_v46, 0.0  ;;  %v2621_v20 = vmul.f32 0.2, %v3280_v46  ;;  %v3282_v58 = vadd.f32 %v2445_v28, %v4489_v7 }
 0x30d   :  { %v2684_v8 = vsel %vm2556_vm12, %v3279_v49, %v2620_v18  ;;  %vm2558_vm14 = vcmp.gt.f32.partialorder %v3281_v21, 0.0  ;;  %v2622_v15 = vmul.f32 0.2, %v3281_v21  ;;  %v4572_v39 = vpop.permute.xlu0 %1779 }
 0x30e   :  { %v2940_v34 = vmul.f32 %v4527_v29, %v2684_v8  ;;  %v2685_v19 = vsel %vm2557_vm13, %v3280_v46, %v2621_v20  ;;  %vm2559_vm15 = vcmp.gt.f32.partialorder %v3282_v58, 0.0  ;;  %v2623_v13 = vmul.f32 0.2, %v3282_v58 }
 0x30f   :  { %v2941_v57 = vmul.f32 %v4527_v29, %v2685_v19  ;;  %v2686_v9 = vsel %vm2558_vm14, %v3281_v21, %v2622_v15 }
 0x310   :  { %v2989_v62 = vadd.f32 %v2988_v0, %v2940_v34  ;;  %v2942_v4 = vmul.f32 %v4536_v61, %v2686_v9  ;;  %v2687_v54 = vsel %vm2559_vm15, %v3282_v58, %v2623_v13  ;;  %v2449_v36 = vpop.f32.mrb[24].mxu1 }
 0x311   :  { %v3026_v7 = vadd.f32 %v3025_v43, %v2941_v57  ;;  %v2943_v10 = vmul.f32 %v4536_v61, %v2687_v54  ;;  %v3283_v31 = vadd.f32 %v2449_v36, %v4495_v63  ;;  %v2451_v23 = vpop.f32.mrb[25].mxu1  ;;  %v2870_v54 = vpop.permute.xlu1 %2869 }
 0x312   :  { %v2990_v11 = vadd.f32 %v2989_v62, %v2942_v4  ;;  %v3284_v14 = vadd.f32 %v2451_v23, %v4495_v63  ;;  %v2453_v29 = vpop.f32.mrb[26].mxu1 }
 0x313   :  { %v3027_v16 = vadd.f32 %v3026_v7, %v2943_v10  ;;  %vm2560_vm0 = vcmp.gt.f32.partialorder %v3283_v31, 0.0  ;;  %v2624_v59 = vmul.f32 0.2, %v3283_v31  ;;  %v3285_v38 = vadd.f32 %v2453_v29, %v4493_v48  ;;  %v2455_v42 = vpop.f32.mrb[27].mxu1 }
 0x314   :  { %vm2561_vm1 = vcmp.gt.f32.partialorder %v3284_v14, 0.0  ;;  %v2625_v55 = vmul.f32 0.2, %v3284_v14  ;;  %v3286_v41 = vadd.f32 %v2455_v42, %v4493_v48 }
 0x315   :  { %v2688_v35 = vsel %vm2560_vm0, %v3283_v31, %v2624_v59  ;;  %vm2562_vm2 = vcmp.gt.f32.partialorder %v3285_v38, 0.0  ;;  %v2626_v61 = vmul.f32 0.2, %v3285_v38 }
 0x316   :  { %v2944_v22 = vmul.f32 %v4533_v56, %v2688_v35  ;;  %v2689_v24 = vsel %vm2561_vm1, %v3284_v14, %v2625_v55  ;;  %vm2563_vm3 = vcmp.gt.f32.partialorder %v3286_v41, 0.0  ;;  %v2627_v63 = vmul.f32 0.2, %v3286_v41  ;;  %v2875_v35 = vpop.permute.xlu1 %2874 }
 0x317   :  { %v2945_v47 = vmul.f32 %v4533_v56, %v2689_v24  ;;  %v2690_v26 = vsel %vm2562_vm2, %v3285_v38, %v2626_v61 }
 0x318   :  { %v2991_v25 = vadd.f32 %v2990_v11, %v2944_v22  ;;  %v2946_v44 = vmul.f32 %v4545_v60, %v2690_v26  ;;  %v2691_v1 = vsel %vm2563_vm3, %v3286_v41, %v2627_v63  ;;  %v2459_v48 = vpop.f32.mrb[28].mxu1 }
 0x319   :  { %v3028_v3 = vadd.f32 %v3027_v16, %v2945_v47  ;;  %v2947_v32 = vmul.f32 %v4545_v60, %v2691_v1  ;;  %v3287_v5 = vadd.f32 %v2459_v48, %v4499_v51  ;;  %v2461_v30 = vpop.f32.mrb[29].mxu1  ;;  %v4583_v60 = vpop.permute.xlu0 %1784 }
 0x31a   :  { %v2992_v2 = vadd.f32 %v2991_v25, %v2946_v44  ;;  %v3288_v33 = vadd.f32 %v2461_v30, %v4499_v51  ;;  %v2463_v49 = vpop.f32.mrb[30].mxu1 }
 0x31b   :  { %v3029_v40 = vadd.f32 %v3028_v3, %v2947_v32  ;;  %vm2564_vm4 = vcmp.gt.f32.partialorder %v3287_v5, 0.0  ;;  %v2628_v0 = vmul.f32 0.2, %v3287_v5  ;;  %v3289_v56 = vadd.f32 %v2463_v49, %v4497_v50  ;;  %v2465_v46 = vpop.f32.mrb[31].mxu1 }
 0x31c   :  { %vm2565_vm5 = vcmp.gt.f32.partialorder %v3288_v33, 0.0  ;;  %v2629_v43 = vmul.f32 0.2, %v3288_v33  ;;  %v3290_v18 = vadd.f32 %v2465_v46, %v4497_v50 }
 0x31d   :  { %v2692_v21 = vsel %vm2564_vm4, %v3287_v5, %v2628_v0  ;;  %vm2566_vm6 = vcmp.gt.f32.partialorder %v3289_v56, 0.0  ;;  %v2630_v28 = vmul.f32 0.2, %v3289_v56  ;;  %v4591_v31 = vpop.permute.xlu0 %1789 }
 0x31e   :  { %v2948_v51 = vmul.f32 %v4542_v12, %v2692_v21  ;;  %v2693_v20 = vsel %vm2565_vm5, %v3288_v33, %v2629_v43  ;;  %vm2567_vm7 = vcmp.gt.f32.partialorder %v3290_v18, 0.0  ;;  %v2631_v58 = vmul.f32 0.2, %v3290_v18 }
 0x31f   :  { %v2949_v8 = vmul.f32 %v4542_v12, %v2693_v20  ;;  %v2694_v15 = vsel %vm2566_vm6, %v3289_v56, %v2630_v28 }
 0x320   :  { %v2993_v34 = vadd.f32 %v2992_v2, %v2948_v51  ;;  %v2950_v19 = vmul.f32 %v4550_v27, %v2694_v15  ;;  %v2695_v13 = vsel %vm2567_vm7, %v3290_v18, %v2631_v58  ;;  %v2469_v57 = vpop.f32.mrb[32].mxu1 }
 0x321   :  { %v3030_v9 = vadd.f32 %v3029_v40, %v2949_v8  ;;  %v2951_v50 = vmul.f32 %v4550_v27, %v2695_v13  ;;  %v3291_v62 = vadd.f32 %v2469_v57, %v4501_v53  ;;  %v2471_v4 = vpop.f32.mrb[33].mxu1  ;;  %v4598_v47 = vpop.permute.xlu0 %1794 }
 0x322   :  { %v2994_v36 = vadd.f32 %v2993_v34, %v2950_v19  ;;  %v3292_v7 = vadd.f32 %v2471_v4, %v4501_v53  ;;  %v2473_v10 = vpop.f32.mrb[34].mxu1  ;;  %v2880_v40 = vpop.permute.xlu1 %2879 }
 0x323   :  { %v3031_v12 = vadd.f32 %v3030_v9, %v2951_v50  ;;  %vm2568_vm8 = vcmp.gt.f32.partialorder %v3291_v62, 0.0  ;;  %v2632_v23 = vmul.f32 0.2, %v3291_v62  ;;  %v3293_v11 = vadd.f32 %v2473_v10, %v4553_v52  ;;  %v2475_v14 = vpop.f32.mrb[35].mxu1 }
 0x324   :  { %vm2569_vm9 = vcmp.gt.f32.partialorder %v3292_v7, 0.0  ;;  %v2633_v29 = vmul.f32 0.2, %v3292_v7  ;;  %v3294_v27 = vadd.f32 %v2475_v14, %v4553_v52 }
 0x325   :  { %v2696_v16 = vsel %vm2568_vm8, %v3291_v62, %v2632_v23  ;;  %vm2570_vm10 = vcmp.gt.f32.partialorder %v3293_v11, 0.0  ;;  %v2634_v59 = vmul.f32 0.2, %v3293_v11  ;;  %v1800_v46 = vpop.permute.xlu0 %1799 }
 0x326   :  { %v2952_v38 = vmul.f32 %v4559_v45, %v2696_v16  ;;  %v2697_v42 = vsel %vm2569_vm9, %v3292_v7, %v2633_v29  ;;  %vm2571_vm11 = vcmp.gt.f32.partialorder %v3294_v27, 0.0  ;;  %v2635_v53 = vmul.f32 0.2, %v3294_v27  ;;  %v2885_v62 = vpop.permute.xlu1 %2884 }
 0x327   :  { %v2953_v55 = vmul.f32 %v4559_v45, %v2697_v42  ;;  %v2698_v41 = vsel %vm2570_vm10, %v3293_v11, %v2634_v59 }
 0x328   :  { %v2995_v61 = vadd.f32 %v2994_v36, %v2952_v38  ;;  %v2954_v22 = vmul.f32 %v4569_v17, %v2698_v41  ;;  %v2699_v24 = vsel %vm2571_vm11, %v3294_v27, %v2635_v53  ;;  %v2479_v63 = vpop.f32.mrb[36].mxu1 }
 0x329   :  { %v3032_v52 = vadd.f32 %v3031_v12, %v2953_v55  ;;  %v2955_v26 = vmul.f32 %v4569_v17, %v2699_v24  ;;  %v3295_v25 = vadd.f32 %v2479_v63, %v4562_v6  ;;  %v2481_v44 = vpop.f32.mrb[37].mxu1  ;;  %v1805_v7 = vpop.permute.xlu0 %1804 }
 0x32a   :  { %v2996_v1 = vadd.f32 %v2995_v61, %v2954_v22  ;;  %v3296_v48 = vadd.f32 %v2481_v44, %v4562_v6  ;;  %v2483_v3 = vpop.f32.mrb[38].mxu1 }
 0x32b   :  { %v3033_v45 = vadd.f32 %v3032_v52, %v2955_v26  ;;  %vm2572_vm12 = vcmp.gt.f32.partialorder %v3295_v25, 0.0  ;;  %v2636_v32 = vmul.f32 0.2, %v3295_v25  ;;  %v3297_v5 = vadd.f32 %v2483_v3, %v4572_v39  ;;  %v2485_v30 = vpop.f32.mrb[39].mxu1 }
 0x32c   :  { %vm2573_vm13 = vcmp.gt.f32.partialorder %v3296_v48, 0.0  ;;  %v2637_v2 = vmul.f32 0.2, %v3296_v48  ;;  %v3298_v33 = vadd.f32 %v2485_v30, %v4572_v39 }
 0x32d   :  { %v2700_v49 = vsel %vm2572_vm12, %v3295_v25, %v2636_v32  ;;  %vm2574_vm14 = vcmp.gt.f32.partialorder %v3297_v5, 0.0  ;;  %v2638_v17 = vmul.f32 0.2, %v3297_v5  ;;  %v1810_v24 = vpop.permute.xlu0 %1809 }
 0x32e   :  { %v2956_v0 = vmul.f32 %v4580_v37, %v2700_v49  ;;  %v2701_v56 = vsel %vm2573_vm13, %v3296_v48, %v2637_v2  ;;  %vm2575_vm15 = vcmp.gt.f32.partialorder %v3298_v33, 0.0  ;;  %v2639_v6 = vmul.f32 0.2, %v3298_v33 }
 0x32f   :  { %v2957_v43 = vmul.f32 %v4580_v37, %v2701_v56  ;;  %v2702_v18 = vsel %vm2574_vm14, %v3297_v5, %v2638_v17 }
 0x330   :  { %v2997_v21 = vadd.f32 %v2996_v1, %v2956_v0  ;;  %v2958_v28 = vmul.f32 %v2870_v54, %v2702_v18  ;;  %v2703_v51 = vsel %vm2575_vm15, %v3298_v33, %v2639_v6  ;;  %v2489_v20 = vpop.f32.mrb[40].mxu1 }
 0x331   :  { %v3034_v58 = vadd.f32 %v3033_v45, %v2957_v43  ;;  %v2959_v8 = vmul.f32 %v2870_v54, %v2703_v51  ;;  %v3299_v39 = vadd.f32 %v2489_v20, %v4583_v60  ;;  %v2491_v15 = vpop.f32.mrb[41].mxu1 }
 0x332   :  { %v2998_v34 = vadd.f32 %v2997_v21, %v2958_v28  ;;  %v3300_v19 = vadd.f32 %v2491_v15, %v4583_v60  ;;  %v2493_v13 = vpop.f32.mrb[42].mxu1 }
 0x333   :  { %v3035_v57 = vadd.f32 %v3034_v58, %v2959_v8  ;;  %vm2576_vm0 = vcmp.gt.f32.partialorder %v3299_v39, 0.0  ;;  %v2640_v9 = vmul.f32 0.2, %v3299_v39  ;;  %v3301_v50 = vadd.f32 %v2493_v13, %v4591_v31  ;;  %v2495_v37 = vpop.f32.mrb[43].mxu1 }
 0x334   :  { %vm2577_vm1 = vcmp.gt.f32.partialorder %v3300_v19, 0.0  ;;  %v2641_v4 = vmul.f32 0.2, %v3300_v19  ;;  %v3302_v36 = vadd.f32 %v2495_v37, %v4591_v31  ;;  %v2890_v31 = vpop.permute.xlu1 %2889 }
 0x335   :  { %v2704_v54 = vsel %vm2576_vm0, %v3299_v39, %v2640_v9  ;;  %vm2578_vm2 = vcmp.gt.f32.partialorder %v3301_v50, 0.0  ;;  %v2642_v10 = vmul.f32 0.2, %v3301_v50 }
 0x336   :  { %v2960_v12 = vmul.f32 %v2875_v35, %v2704_v54  ;;  %v2705_v23 = vsel %vm2577_vm1, %v3300_v19, %v2641_v4  ;;  %vm2579_vm3 = vcmp.gt.f32.partialorder %v3302_v36, 0.0  ;;  %v2643_v60 = vmul.f32 0.2, %v3302_v36 }
 0x337   :  { %v2961_v11 = vmul.f32 %v2875_v35, %v2705_v23  ;;  %v2706_v14 = vsel %vm2578_vm2, %v3301_v50, %v2642_v10 }
 0x338   :  { %v2999_v29 = vadd.f32 %v2998_v34, %v2960_v12  ;;  %v2962_v27 = vmul.f32 %v2880_v40, %v2706_v14  ;;  %v2707_v16 = vsel %vm2579_vm3, %v3302_v36, %v2643_v60  ;;  %v2499_v59 = vpop.f32.mrb[44].mxu1 }
 0x339   :  { %v3036_v38 = vadd.f32 %v3035_v57, %v2961_v11  ;;  %v2963_v42 = vmul.f32 %v2880_v40, %v2707_v16  ;;  %v3303_v53 = vadd.f32 %v2499_v59, %v4598_v47  ;;  %v2501_v55 = vpop.f32.mrb[45].mxu1  ;;  %v1815_v40 = vpop.permute.xlu0 %1814 }
 0x33a   :  { %v3000_v41 = vadd.f32 %v2999_v29, %v2962_v27  ;;  %v3304_v61 = vadd.f32 %v2501_v55, %v4598_v47  ;;  %v2503_v22 = vpop.f32.mrb[46].mxu1  ;;  %v2895_v47 = vpop.permute.xlu1 %2894 }
 0x33b   :  { %v3037_v63 = vadd.f32 %v3036_v38, %v2963_v42  ;;  %vm2580_vm4 = vcmp.gt.f32.partialorder %v3303_v53, 0.0  ;;  %v2644_v52 = vmul.f32 0.2, %v3303_v53  ;;  %v3305_v35 = vadd.f32 %v2503_v22, %v1800_v46  ;;  %v2505_v26 = vpop.f32.mrb[47].mxu1 }
 0x33c   :  { %vm2581_vm5 = vcmp.gt.f32.partialorder %v3304_v61, 0.0  ;;  %v2645_v25 = vmul.f32 0.2, %v3304_v61  ;;  %v3306_v44 = vadd.f32 %v2505_v26, %v1800_v46 }
 0x33d   :  { %v2708_v1 = vsel %vm2580_vm4, %v3303_v53, %v2644_v52  ;;  %vm2582_vm6 = vcmp.gt.f32.partialorder %v3305_v35, 0.0  ;;  %v2646_v48 = vmul.f32 0.2, %v3305_v35  ;;  %v1820_v50 = vpop.permute.xlu0 %1819 }
 0x33e   :  { %v2964_v3 = vmul.f32 %v2885_v62, %v2708_v1  ;;  %v2709_v45 = vsel %vm2581_vm5, %v3304_v61, %v2645_v25  ;;  %vm2583_vm7 = vcmp.gt.f32.partialorder %v3306_v44, 0.0  ;;  %v2647_v32 = vmul.f32 0.2, %v3306_v44  ;;  %v2900_v9 = vpop.permute.xlu1 %2899 }
 0x33f   :  { %v2965_v5 = vmul.f32 %v2885_v62, %v2709_v45  ;;  %v2710_v30 = vsel %vm2582_vm6, %v3305_v35, %v2646_v48 }
 0x340   :  { %v3001_v2 = vadd.f32 %v3000_v41, %v2964_v3  ;;  %v2966_v33 = vmul.f32 %v2890_v31, %v2710_v30  ;;  %v2711_v49 = vsel %vm2583_vm7, %v3306_v44, %v2647_v32  ;;  %v2509_v17 = vpop.f32.mrb[48].mxu1  ;;  %v3056_v3 = vlaneseq }
 0x341   :  { %v3038_v0 = vadd.f32 %v3037_v63, %v2965_v5  ;;  %v2967_v56 = vmul.f32 %v2890_v31, %v2711_v49  ;;  %v3307_v6 = vadd.f32 %v2509_v17, %v1805_v7  ;;  %v2511_v43 = vpop.f32.mrb[49].mxu1  ;;  %v2905_v55 = vpop.permute.xlu0 %2904 }
 0x342   :  { %v3002_v46 = vadd.f32 %v3001_v2, %v2966_v33  ;;  %v3308_v18 = vadd.f32 %v2511_v43, %v1805_v7  ;;  %v2513_v21 = vpop.f32.mrb[50].mxu1  ;;  %v2910_v63 = vpop.permute.xlu1 %2909  ;;  %vm3092_vm0 = vcmp.lt.s32.totalorder %v3056_v3, 256 }
 0x343   :  { %v3039_v28 = vadd.f32 %v3038_v0, %v2967_v56  ;;  %vm2584_vm8 = vcmp.gt.f32.partialorder %v3307_v6, 0.0  ;;  %v2648_v51 = vmul.f32 0.2, %v3307_v6  ;;  %v3309_v20 = vadd.f32 %v2513_v21, %v1810_v24  ;;  %v2515_v58 = vpop.f32.mrb[51].mxu1 }
 0x344   :  { %vm2585_vm9 = vcmp.gt.f32.partialorder %v3308_v18, 0.0  ;;  %v2649_v8 = vmul.f32 0.2, %v3308_v18  ;;  %v3310_v39 = vadd.f32 %v2515_v58, %v1810_v24 }
 0x345   :  { %v2712_v15 = vsel %vm2584_vm8, %v3307_v6, %v2648_v51  ;;  %vm2586_vm10 = vcmp.gt.f32.partialorder %v3309_v20, 0.0  ;;  %v2650_v34 = vmul.f32 0.2, %v3309_v20  ;;  %v3054_v56 = vpop.permute.xlu0 %3053 }
 0x346   :  { %v2968_v19 = vmul.f32 %v2895_v47, %v2712_v15  ;;  %v2713_v13 = vsel %vm2585_vm9, %v3308_v18, %v2649_v8  ;;  %vm2587_vm11 = vcmp.gt.f32.partialorder %v3310_v39, 0.0  ;;  %v2651_v57 = vmul.f32 0.2, %v3310_v39 }
 0x347   :  { %v2969_v37 = vmul.f32 %v2895_v47, %v2713_v13  ;;  %v2714_v62 = vsel %vm2586_vm10, %v3309_v20, %v2650_v34  ;;  %v3057_v47 = vshrl.u32 %v3056_v3, 7 }
 0x348   :  { %v3003_v4 = vadd.f32 %v3002_v46, %v2968_v19  ;;  %v2970_v36 = vmul.f32 %v2900_v9, %v2714_v62  ;;  %v2715_v7 = vsel %vm2587_vm11, %v3310_v39, %v2651_v57  ;;  %v2519_v54 = vpop.f32.mrb[52].mxu1 }
 0x349   :  { %v3040_v10 = vadd.f32 %v3039_v28, %v2969_v37  ;;  %v2971_v12 = vmul.f32 %v2900_v9, %v2715_v7  ;;  %v3311_v23 = vadd.f32 %v2519_v54, %v1815_v40  ;;  %v2521_v60 = vpop.f32.mrb[53].mxu1  ;;  %v3536_v9 = vmov 1966171168  }
 0x34a   :  { %v3004_v11 = vadd.f32 %v3003_v4, %v2970_v36  ;;  %v3312_v14 = vadd.f32 %v2521_v60, %v1815_v40  ;;  %v2523_v29 = vpop.f32.mrb[54].mxu1  ;;  %v3058_v40 = vsub.s32 0, %v3057_v47 }
 0x34b   :  { %v3041_v27 = vadd.f32 %v3040_v10, %v2971_v12  ;;  %vm2588_vm12 = vcmp.gt.f32.partialorder %v3311_v23, 0.0  ;;  %v2652_v16 = vmul.f32 0.2, %v3311_v23  ;;  %v3313_v59 = vadd.f32 %v2523_v29, %v1820_v50  ;;  %v2525_v38 = vpop.f32.mrb[55].mxu1 }
 0x34c   :  { %vm2589_vm13 = vcmp.gt.f32.partialorder %v3312_v14, 0.0  ;;  %v2653_v42 = vmul.f32 0.2, %v3312_v14  ;;  %v3314_v53 = vadd.f32 %v2525_v38, %v1820_v50  ;;  %v3059_v18 = vrot.slane %v3054_v56, %v3058_v40 }
 0x34d   :  { %v2716_v31 = vsel %vm2588_vm12, %v3311_v23, %v2652_v16  ;;  %vm2590_vm14 = vcmp.gt.f32.partialorder %v3313_v59, 0.0  ;;  %v2654_v41 = vmul.f32 0.2, %v3313_v59  ;;  %v3076_v50 = vunpack.c.l.s4 %v3536_v9 }
 0x34e   :  { %v2972_v61 = vmul.f32 %v2905_v55, %v2716_v31  ;;  %v2717_v22 = vsel %vm2589_vm13, %v3312_v14, %v2653_v42  ;;  %vm2591_vm15 = vcmp.gt.f32.partialorder %v3314_v53, 0.0  ;;  %v2655_v24 = vmul.f32 0.2, %v3314_v53 }
 0x34f   :  { %v2973_v52 = vmul.f32 %v2905_v55, %v2717_v22  ;;  %v2718_v35 = vsel %vm2590_vm14, %v3313_v59, %v2654_v41  ;;  %v3077_v37 = vunpack.c.0.s8 %v3076_v50 }
 0x350   :  { %v3005_v26 = vadd.f32 %v3004_v11, %v2972_v61  ;;  %v2974_v25 = vmul.f32 %v2910_v63, %v2718_v35  ;;  %v2719_v44 = vsel %vm2591_vm15, %v3314_v53, %v2655_v24 }
 0x351   :  { %v3042_v1 = vadd.f32 %v3041_v27, %v2973_v52  ;;  %v2975_v48 = vmul.f32 %v2910_v63, %v2719_v44  ;;  %v3080_v4 = vsub.s32 %v3077_v37, %v3057_v47 }
 0x352   :  { %v3006_v45 = vadd.f32 %v3005_v26, %v2974_v25 }
 0x353   :  { %v3043_v32 = vadd.f32 %v3042_v1, %v2975_v48 }
 0x354   :  { %v3007_v5 = vrot.slane %v3006_v45, 4 }
 0x355   :  { %v3044_v30 = vrot.slane %v3043_v32, 4 }
 0x356   :  { %v3008_v2 = vadd.f32 %v3007_v5, %v3006_v45 }
 0x357   :  { %v3045_v33 = vadd.f32 %v3044_v30, %v3043_v32 }
 0x358   :  { %v3009_v49 = vrot.slane %v3008_v2, 2 }
 0x359   :  { %v3046_v17 = vrot.slane %v3045_v33, 2 }
 0x35a   :  { %v3010_v0 = vadd.f32 %v3009_v49, %v3008_v2 }
 0x35b   :  { %v3047_v6 = vadd.f32 %v3046_v17, %v3045_v33 }
 0x35c   :  { %v3011_v43 = vrot.slane %v3010_v0, 1 }
 0x35d   :  { %v3048_v46 = vrot.slane %v3047_v6, 1 }
 0x35e   :  { %v3012_v21 = vadd.f32 %v3011_v43, %v3010_v0 }
 0x35f   :  { %v3049_v28 = vadd.f32 %v3048_v46, %v3047_v6 }
 0x360   :  { %v3060_v51 = vadd.f32 %v3059_v18, %v3012_v21 }
 0x361   :  { %v3061_v20 = vadd.f32 %v3059_v18, %v3049_v28 }
 0x362   :  { %v3062_v58 = vsub.f32 0.0, %v3060_v51 }
 0x363   :  { %v3063_v8 = vsub.f32 0.0, %v3061_v20 }
 0x364   :  { %v3064_v39 = vmul.f32 1.442695, %v3062_v58 }
 0x365   :  { %v3066_v15 = vmul.f32 1.442695, %v3063_v8 }
 0x366   :  { %3527 = vpow2.f32 %v3064_v39 }
 0x367   :  { %3529 = vpow2.f32 %v3066_v15 }
 0x370   :  { %v3528_v34 = vpop.eup %3527 }
 0x371   :  { %v3530_v19 = vpop.eup %3529  ;;  %v3068_v13 = vadd.f32 1.0, %v3528_v34 }
 0x372   :  { %v3069_v57 = vadd.f32 1.0, %v3530_v19 }
 0x373   :  { %3531 = vrcp.f32 %v3068_v13 }
 0x374   :  { %3533 = vrcp.f32 %v3069_v57 }
 0x37d   :  { %v3532_v62 = vpop.eup %3531 }
 0x37e   :  { %v3534_v36 = vpop.eup %3533 }
 0x37f   :  { %v3074_v7 = vcombine.low %v3532_v62, %v3534_v36 }
 0x381   :  { %v3081_v54 = vrot.slane %v3074_v7, %v3080_v4 }
 0x383   :  { %v3088_v10 = vrot.slane %v3081_v54, %v3080_v4 }
 0x385   :  { %3094 = vst.msk [vmem:[%s4623_s7] sm:$0x3] %vm3092_vm0, %v3088_v10 }

</bundles_post_ra>
